<compile_context>
chip_gen: v7x
topology: tpu7x:2x2x1
jax: 0.10.0
libtpu: 0.0.40
codegen_flags: <defaults>
</compile_context>

<pallas_src>
import jax
import jax.numpy as jnp
from jax.experimental import pallas as pl
from jax.experimental.pallas import tpu as pltpu

# ----------------------------- model config ---------------------------------
VOCAB = 100
MAX_POS = 16
H = 32            # BERT hidden size (bert.pooler.dense.out_features)
NH = 2            # attention heads
HD = H // NH      # head dim
INTER = 64        # FFN intermediate size
NLAYERS = 2
MLP_HIDDEN = 32   # `hidden_dim` of the classifier head
NUM_CLASS = 4
LN_EPS = 1e-12

B, S = 2, 8       # example batch / sequence length


# ------------------------------ fused kernel ---------------------------------
def _layernorm(x, g, b):
    mu = jnp.mean(x, axis=-1, keepdims=True)
    xc = x - mu
    var = jnp.mean(xc * xc, axis=-1, keepdims=True)
    return xc * jax.lax.rsqrt(var + LN_EPS) * g + b


def _gelu(x):
    # tanh-approx GELU (EUP-friendly on TPU; HF default is erf-based).
    return 0.5 * x * (1.0 + jnp.tanh(0.7978845608028654 * (x + 0.044715 * x * x * x)))


def _fused_forward_kernel(
    x_ref, mask_ref,
    wqkv_ref, bqkv_ref, wo_ref, bo_ref, ln1g_ref, ln1b_ref,
    w1_ref, b1_ref, w2_ref, b2_ref, ln2g_ref, ln2b_ref,
    emb_g_ref, emb_b_ref,
    pool_w_ref, pool_b_ref,
    fc1_w_ref, fc1_b_ref, fc2_w_ref, fc2_b_ref,
    o_ref,
):
    scale = HD ** -0.5

    x = x_ref[...]          # [B*S, H] summed embeddings
    mask = mask_ref[...]    # [B, S] additive attention-mask bias

    # --- embedding LayerNorm (no residual, no zero tensor materialized) ---
    x = _layernorm(x, emb_g_ref[...], emb_b_ref[...])

    # --- transformer encoder layers (statically unrolled) ---
    for l in range(NLAYERS):
        # fused QKV projection: one [B*S, H] x [H, 3H] matmul
        qkv = jnp.dot(x, wqkv_ref[l], preferred_element_type=jnp.float32) + bqkv_ref[l]
        q = qkv[:, 0:H]
        k = qkv[:, H:2 * H]
        v = qkv[:, 2 * H:3 * H]

        # per-(batch, head) attention with in-kernel head slicing (no XLA
        # transposes); results reassembled with static concatenates.
        batch_ctx = []
        for b in range(B):
            mask_b = mask[b:b + 1, :]                        # [1, S]
            head_ctx = []
            for h in range(NH):
                qb = q[b * S:(b + 1) * S, h * HD:(h + 1) * HD]   # [S, HD]
                kb = k[b * S:(b + 1) * S, h * HD:(h + 1) * HD]
                vb = v[b * S:(b + 1) * S, h * HD:(h + 1) * HD]
                s = jax.lax.dot_general(
                    qb, kb, (((1,), (1,)), ((), ())),
                    preferred_element_type=jnp.float32) * scale
                s = s + mask_b
                s = s - jnp.max(s, axis=-1, keepdims=True)
                p = jnp.exp(s)
                p = p / jnp.sum(p, axis=-1, keepdims=True)
                head_ctx.append(
                    jnp.dot(p, vb, preferred_element_type=jnp.float32))
            batch_ctx.append(jnp.concatenate(head_ctx, axis=1))  # [S, H]
        ctx = jnp.concatenate(batch_ctx, axis=0)                 # [B*S, H]

        attn_out = jnp.dot(ctx, wo_ref[l],
                           preferred_element_type=jnp.float32) + bo_ref[l]
        x = _layernorm(attn_out + x, ln1g_ref[l], ln1b_ref[l])

        # FFN: w1 -> GELU -> w2, residual + LayerNorm
        ff = jnp.dot(x, w1_ref[l], preferred_element_type=jnp.float32) + b1_ref[l]
        ff = _gelu(ff)
        ff = jnp.dot(ff, w2_ref[l], preferred_element_type=jnp.float32) + b2_ref[l]
        x = _layernorm(ff + x, ln2g_ref[l], ln2b_ref[l])

    # --- pooler: tanh(W_p @ x[CLS]) on rows b*S ---
    cls = jnp.concatenate([x[b * S:b * S + 1, :] for b in range(B)], axis=0)  # [B, H]
    pooled = jnp.tanh(
        jnp.dot(cls, pool_w_ref[...], preferred_element_type=jnp.float32)
        + pool_b_ref[...])

    # --- classifier head: fc1 -> ReLU -> dropout(eval) -> fc2 -> softmax(dim=1) ---
    h1 = jnp.dot(pooled, fc1_w_ref[...], preferred_element_type=jnp.float32) + fc1_b_ref[...]
    h1 = jnp.maximum(h1, 0.0)
    # TODO(synk): nn.Dropout(0.2) train-mode random masking omitted (identity at inference).
    logits = jnp.dot(h1, fc2_w_ref[...], preferred_element_type=jnp.float32) + fc2_b_ref[...]
    logits = logits - jnp.max(logits, axis=1, keepdims=True)
    e = jnp.exp(logits)
    o_ref[...] = e / jnp.sum(e, axis=1, keepdims=True)


# --------------------------- parameter initialization ------------------------
def init_params(key):
    def nrm(k, shape, std=0.02):
        return (std * jax.random.normal(k, shape)).astype(jnp.float32)

    keys = iter(jax.random.split(key, 32))
    params = {
        "word_emb": nrm(next(keys), (VOCAB, H)),
        "pos_emb": nrm(next(keys), (MAX_POS, H)),
        "type_emb": nrm(next(keys), (2, H)),
        "emb_ln_g": jnp.ones((1, H), jnp.float32),
        "emb_ln_b": jnp.zeros((1, H), jnp.float32),
        # per-layer weights stacked on a leading layer axis; QKV concatenated.
        "wqkv": nrm(next(keys), (NLAYERS, H, 3 * H)),
        "bqkv": jnp.zeros((NLAYERS, 1, 3 * H), jnp.float32),
        "wo": nrm(next(keys), (NLAYERS, H, H)),
        "bo": jnp.zeros((NLAYERS, 1, H), jnp.float32),
        "ln1_g": jnp.ones((NLAYERS, 1, H), jnp.float32),
        "ln1_b": jnp.zeros((NLAYERS, 1, H), jnp.float32),
        "w1": nrm(next(keys), (NLAYERS, H, INTER)),
        "b1": jnp.zeros((NLAYERS, 1, INTER), jnp.float32),
        "w2": nrm(next(keys), (NLAYERS, INTER, H)),
        "b2": jnp.zeros((NLAYERS, 1, H), jnp.float32),
        "ln2_g": jnp.ones((NLAYERS, 1, H), jnp.float32),
        "ln2_b": jnp.zeros((NLAYERS, 1, H), jnp.float32),
        "pool_w": nrm(next(keys), (H, H)),
        "pool_b": jnp.zeros((1, H), jnp.float32),
        "fc1_w": nrm(next(keys), (H, MLP_HIDDEN)),
        "fc1_b": jnp.zeros((1, MLP_HIDDEN), jnp.float32),
        "fc2_w": nrm(next(keys), (MLP_HIDDEN, NUM_CLASS)),
        "fc2_b": jnp.zeros((1, NUM_CLASS), jnp.float32),
    }
    return params


# -------------------------------- forward ------------------------------------
def forward(params, input_ids, attention_mask):
    bsz, seq = input_ids.shape

    # --- embedding lookups (gathers are plain-JAX glue) ---
    x = (params["word_emb"][input_ids]
         + params["pos_emb"][:seq][None, :, :]
         + params["type_emb"][0][None, None, :])
    x = x.reshape(bsz * seq, H).astype(jnp.float32)

    # additive attention-mask bias, BERT style: (1 - mask) * -1e9 -> (B, S)
    mask_bias = (1.0 - attention_mask.astype(jnp.float32)) * -1e9

    # single fused pallas_call: no grid, everything resident in VMEM.
    return pl.pallas_call(
        _fused_forward_kernel,
        out_shape=jax.ShapeDtypeStruct((bsz, NUM_CLASS), jnp.float32),
    )(
        x, mask_bias,
        params["wqkv"], params["bqkv"], params["wo"], params["bo"],
        params["ln1_g"], params["ln1_b"],
        params["w1"], params["b1"], params["w2"], params["b2"],
        params["ln2_g"], params["ln2_b"],
        params["emb_ln_g"], params["emb_ln_b"],
        params["pool_w"], params["pool_b"],
        params["fc1_w"], params["fc1_b"], params["fc2_w"], params["fc2_b"],
    )


# --------------------------------- main ---------------------------------------
if __name__ == "__main__":
    params = init_params(jax.random.PRNGKey(42))

    key = jax.random.PRNGKey(0)
    k_ids, _ = jax.random.split(key)
    input_ids = jax.random.randint(k_ids, (B, S), 0, VOCAB, dtype=jnp.int32)
    attention_mask = jnp.ones((B, S), dtype=jnp.int32).at[1, 6:].set(0)

    probs = jax.jit(forward)(params, input_ids, attention_mask)
    probs = jax.block_until_ready(probs)

    assert probs.shape == (B, NUM_CLASS)
    row_sums = jnp.sum(probs, axis=1)
    assert bool(jnp.all(jnp.abs(row_sums - 1.0) < 1e-4))
    assert bool(jnp.all(jnp.isfinite(probs)))
    print("KERNEL_OK")
</pallas_src>

<mosaic_0001>
module attributes {stable_mosaic.version = 11 : i64} {
  func.func @_fused_forward_kernel(%arg0: memref<16x32xf32, #tpu.memory_space<vmem>>, %arg1: memref<2x8xf32, #tpu.memory_space<vmem>>, %arg2: memref<2x32x96xf32, #tpu.memory_space<vmem>>, %arg3: memref<2x1x96xf32, #tpu.memory_space<vmem>>, %arg4: memref<2x32x32xf32, #tpu.memory_space<vmem>>, %arg5: memref<2x1x32xf32, #tpu.memory_space<vmem>>, %arg6: memref<2x1x32xf32, #tpu.memory_space<vmem>>, %arg7: memref<2x1x32xf32, #tpu.memory_space<vmem>>, %arg8: memref<2x32x64xf32, #tpu.memory_space<vmem>>, %arg9: memref<2x1x64xf32, #tpu.memory_space<vmem>>, %arg10: memref<2x64x32xf32, #tpu.memory_space<vmem>>, %arg11: memref<2x1x32xf32, #tpu.memory_space<vmem>>, %arg12: memref<2x1x32xf32, #tpu.memory_space<vmem>>, %arg13: memref<2x1x32xf32, #tpu.memory_space<vmem>>, %arg14: memref<1x32xf32, #tpu.memory_space<vmem>>, %arg15: memref<1x32xf32, #tpu.memory_space<vmem>>, %arg16: memref<32x32xf32, #tpu.memory_space<vmem>>, %arg17: memref<1x32xf32, #tpu.memory_space<vmem>>, %arg18: memref<32x32xf32, #tpu.memory_space<vmem>>, %arg19: memref<1x32xf32, #tpu.memory_space<vmem>>, %arg20: memref<32x4xf32, #tpu.memory_space<vmem>>, %arg21: memref<1x4xf32, #tpu.memory_space<vmem>>, %arg22: memref<2x4xf32, #tpu.memory_space<vmem>>) attributes {dimension_semantics = [], scalar_prefetch = 0 : i64, scratch_operands = 0 : i64, tpu.core_type = #tpu.core_type<tc>} {
    %c0 = arith.constant 0 : index
    %c0_0 = arith.constant 0 : index
    %0 = vector.load %arg0[%c0, %c0_0] : memref<16x32xf32, #tpu.memory_space<vmem>>, vector<16x32xf32>
    %c0_1 = arith.constant 0 : index
    %c0_2 = arith.constant 0 : index
    %1 = vector.load %arg1[%c0_1, %c0_2] : memref<2x8xf32, #tpu.memory_space<vmem>>, vector<2x8xf32>
    %c0_3 = arith.constant 0 : index
    %c0_4 = arith.constant 0 : index
    %2 = vector.load %arg14[%c0_3, %c0_4] : memref<1x32xf32, #tpu.memory_space<vmem>>, vector<1x32xf32>
    %c0_5 = arith.constant 0 : index
    %c0_6 = arith.constant 0 : index
    %3 = vector.load %arg15[%c0_5, %c0_6] : memref<1x32xf32, #tpu.memory_space<vmem>>, vector<1x32xf32>
    %cst = arith.constant dense<0.000000e+00> : vector<16xf32>
    %4 = vector.multi_reduction <add>, %0, %cst [1] : vector<16x32xf32> to vector<16xf32>
    %5 = vector.shape_cast %4 : vector<16xf32> to vector<16x1xf32>
    %cst_7 = arith.constant 3.200000e+01 : f32
    %6 = vector.broadcast %cst_7 : f32 to vector<16x1xf32>
    %7 = arith.divf %5, %6 : vector<16x1xf32>
    %8 = vector.broadcast %7 : vector<16x1xf32> to vector<16x32xf32>
    %9 = arith.subf %0, %8 : vector<16x32xf32>
    %10 = arith.mulf %9, %9 : vector<16x32xf32>
    %cst_8 = arith.constant dense<0.000000e+00> : vector<16xf32>
    %11 = vector.multi_reduction <add>, %10, %cst_8 [1] : vector<16x32xf32> to vector<16xf32>
    %12 = vector.shape_cast %11 : vector<16xf32> to vector<16x1xf32>
    %cst_9 = arith.constant 3.200000e+01 : f32
    %13 = vector.broadcast %cst_9 : f32 to vector<16x1xf32>
    %14 = arith.divf %12, %13 : vector<16x1xf32>
    %cst_10 = arith.constant 9.99999996E-13 : f32
    %15 = vector.broadcast %cst_10 : f32 to vector<16x1xf32>
    %16 = arith.addf %14, %15 : vector<16x1xf32>
    %17 = math.rsqrt %16 : vector<16x1xf32>
    %18 = vector.broadcast %17 : vector<16x1xf32> to vector<16x32xf32>
    %19 = arith.mulf %9, %18 : vector<16x32xf32>
    %20 = vector.broadcast %2 : vector<1x32xf32> to vector<16x32xf32>
    %21 = arith.mulf %19, %20 : vector<16x32xf32>
    %22 = vector.broadcast %3 : vector<1x32xf32> to vector<16x32xf32>
    %23 = arith.addf %21, %22 : vector<16x32xf32>
    %c0_11 = arith.constant 0 : index
    %c0_12 = arith.constant 0 : index
    %c0_13 = arith.constant 0 : index
    %24 = vector.load %arg2[%c0_11, %c0_12, %c0_13] : memref<2x32x96xf32, #tpu.memory_space<vmem>>, vector<1x32x96xf32>
    %25 = vector.shape_cast %24 : vector<1x32x96xf32> to vector<32x96xf32>
    %cst_14 = arith.constant dense<0.000000e+00> : vector<16x96xf32>
    %26 = tpu.matmul %23, %25, %cst_14 {dimension_numbers = #tpu.dot_dimension_numbers<[1], [0], [0], [1], [0, 0, 1, 1], [], []>} : vector<16x32xf32>, vector<32x96xf32>, vector<16x96xf32> -> vector<16x96xf32>
    %c0_15 = arith.constant 0 : index
    %c0_16 = arith.constant 0 : index
    %c0_17 = arith.constant 0 : index
    %27 = vector.load %arg3[%c0_15, %c0_16, %c0_17] : memref<2x1x96xf32, #tpu.memory_space<vmem>>, vector<1x1x96xf32>
    %28 = vector.shape_cast %27 : vector<1x1x96xf32> to vector<1x96xf32>
    %29 = vector.broadcast %28 : vector<1x96xf32> to vector<16x96xf32>
    %30 = arith.addf %26, %29 : vector<16x96xf32>
    %31 = vector.extract_strided_slice %30 {offsets = [0, 0], sizes = [16, 32], strides = [1, 1]} : vector<16x96xf32> to vector<16x32xf32>
    %32 = vector.extract_strided_slice %30 {offsets = [0, 32], sizes = [16, 32], strides = [1, 1]} : vector<16x96xf32> to vector<16x32xf32>
    %33 = vector.extract_strided_slice %30 {offsets = [0, 64], sizes = [16, 32], strides = [1, 1]} : vector<16x96xf32> to vector<16x32xf32>
    %34 = vector.extract_strided_slice %1 {offsets = [0, 0], sizes = [1, 8], strides = [1, 1]} : vector<2x8xf32> to vector<1x8xf32>
    %35 = vector.extract_strided_slice %31 {offsets = [0, 0], sizes = [8, 16], strides = [1, 1]} : vector<16x32xf32> to vector<8x16xf32>
    %36 = vector.extract_strided_slice %32 {offsets = [0, 0], sizes = [8, 16], strides = [1, 1]} : vector<16x32xf32> to vector<8x16xf32>
    %37 = vector.extract_strided_slice %33 {offsets = [0, 0], sizes = [8, 16], strides = [1, 1]} : vector<16x32xf32> to vector<8x16xf32>
    %cst_18 = arith.constant dense<0.000000e+00> : vector<8x8xf32>
    %38 = tpu.matmul %35, %36, %cst_18 {dimension_numbers = #tpu.dot_dimension_numbers<[1], [1], [0], [0], [0, 0, 1, 0], [], []>} : vector<8x16xf32>, vector<8x16xf32>, vector<8x8xf32> -> vector<8x8xf32>
    %cst_19 = arith.constant 2.500000e-01 : f32
    %39 = vector.broadcast %cst_19 : f32 to vector<8x8xf32>
    %40 = arith.mulf %38, %39 : vector<8x8xf32>
    %41 = vector.broadcast %34 : vector<1x8xf32> to vector<8x8xf32>
    %42 = arith.addf %40, %41 : vector<8x8xf32>
    %cst_20 = arith.constant dense<0xFF800000> : vector<8xf32>
    %43 = vector.multi_reduction <maximumf>, %42, %cst_20 [1] : vector<8x8xf32> to vector<8xf32>
    %44 = vector.shape_cast %43 : vector<8xf32> to vector<8x1xf32>
    %45 = vector.broadcast %44 : vector<8x1xf32> to vector<8x8xf32>
    %46 = arith.subf %42, %45 : vector<8x8xf32>
    %47 = math.exp %46 : vector<8x8xf32>
    %cst_21 = arith.constant dense<0.000000e+00> : vector<8xf32>
    %48 = vector.multi_reduction <add>, %47, %cst_21 [1] : vector<8x8xf32> to vector<8xf32>
    %49 = vector.shape_cast %48 : vector<8xf32> to vector<8x1xf32>
    %50 = vector.broadcast %49 : vector<8x1xf32> to vector<8x8xf32>
    %51 = arith.divf %47, %50 : vector<8x8xf32>
    %cst_22 = arith.constant dense<0.000000e+00> : vector<8x16xf32>
    %52 = tpu.matmul %51, %37, %cst_22 {dimension_numbers = #tpu.dot_dimension_numbers<[1], [0], [0], [1], [0, 0, 1, 1], [], []>} : vector<8x8xf32>, vector<8x16xf32>, vector<8x16xf32> -> vector<8x16xf32>
    %53 = vector.extract_strided_slice %31 {offsets = [0, 16], sizes = [8, 16], strides = [1, 1]} : vector<16x32xf32> to vector<8x16xf32>
    %54 = vector.extract_strided_slice %32 {offsets = [0, 16], sizes = [8, 16], strides = [1, 1]} : vector<16x32xf32> to vector<8x16xf32>
    %55 = vector.extract_strided_slice %33 {offsets = [0, 16], sizes = [8, 16], strides = [1, 1]} : vector<16x32xf32> to vector<8x16xf32>
    %cst_23 = arith.constant dense<0.000000e+00> : vector<8x8xf32>
    %56 = tpu.matmul %53, %54, %cst_23 {dimension_numbers = #tpu.dot_dimension_numbers<[1], [1], [0], [0], [0, 0, 1, 0], [], []>} : vector<8x16xf32>, vector<8x16xf32>, vector<8x8xf32> -> vector<8x8xf32>
    %cst_24 = arith.constant 2.500000e-01 : f32
    %57 = vector.broadcast %cst_24 : f32 to vector<8x8xf32>
    %58 = arith.mulf %56, %57 : vector<8x8xf32>
    %59 = vector.broadcast %34 : vector<1x8xf32> to vector<8x8xf32>
    %60 = arith.addf %58, %59 : vector<8x8xf32>
    %cst_25 = arith.constant dense<0xFF800000> : vector<8xf32>
    %61 = vector.multi_reduction <maximumf>, %60, %cst_25 [1] : vector<8x8xf32> to vector<8xf32>
    %62 = vector.shape_cast %61 : vector<8xf32> to vector<8x1xf32>
    %63 = vector.broadcast %62 : vector<8x1xf32> to vector<8x8xf32>
    %64 = arith.subf %60, %63 : vector<8x8xf32>
    %65 = math.exp %64 : vector<8x8xf32>
    %cst_26 = arith.constant dense<0.000000e+00> : vector<8xf32>
    %66 = vector.multi_reduction <add>, %65, %cst_26 [1] : vector<8x8xf32> to vector<8xf32>
    %67 = vector.shape_cast %66 : vector<8xf32> to vector<8x1xf32>
    %68 = vector.broadcast %67 : vector<8x1xf32> to vector<8x8xf32>
    %69 = arith.divf %65, %68 : vector<8x8xf32>
    %cst_27 = arith.constant dense<0.000000e+00> : vector<8x16xf32>
    %70 = tpu.matmul %69, %55, %cst_27 {dimension_numbers = #tpu.dot_dimension_numbers<[1], [0], [0], [1], [0, 0, 1, 1], [], []>} : vector<8x8xf32>, vector<8x16xf32>, vector<8x16xf32> -> vector<8x16xf32>
    %71 = tpu.concatenate %52, %70 in 1 : vector<8x16xf32>, vector<8x16xf32> -> vector<8x32xf32>
    %72 = vector.extract_strided_slice %1 {offsets = [1, 0], sizes = [1, 8], strides = [1, 1]} : vector<2x8xf32> to vector<1x8xf32>
    %73 = vector.extract_strided_slice %31 {offsets = [8, 0], sizes = [8, 16], strides = [1, 1]} : vector<16x32xf32> to vector<8x16xf32>
    %74 = vector.extract_strided_slice %32 {offsets = [8, 0], sizes = [8, 16], strides = [1, 1]} : vector<16x32xf32> to vector<8x16xf32>
    %75 = vector.extract_strided_slice %33 {offsets = [8, 0], sizes = [8, 16], strides = [1, 1]} : vector<16x32xf32> to vector<8x16xf32>
    %cst_28 = arith.constant dense<0.000000e+00> : vector<8x8xf32>
    %76 = tpu.matmul %73, %74, %cst_28 {dimension_numbers = #tpu.dot_dimension_numbers<[1], [1], [0], [0], [0, 0, 1, 0], [], []>} : vector<8x16xf32>, vector<8x16xf32>, vector<8x8xf32> -> vector<8x8xf32>
    %cst_29 = arith.constant 2.500000e-01 : f32
    %77 = vector.broadcast %cst_29 : f32 to vector<8x8xf32>
    %78 = arith.mulf %76, %77 : vector<8x8xf32>
    %79 = vector.broadcast %72 : vector<1x8xf32> to vector<8x8xf32>
    %80 = arith.addf %78, %79 : vector<8x8xf32>
    %cst_30 = arith.constant dense<0xFF800000> : vector<8xf32>
    %81 = vector.multi_reduction <maximumf>, %80, %cst_30 [1] : vector<8x8xf32> to vector<8xf32>
    %82 = vector.shape_cast %81 : vector<8xf32> to vector<8x1xf32>
    %83 = vector.broadcast %82 : vector<8x1xf32> to vector<8x8xf32>
    %84 = arith.subf %80, %83 : vector<8x8xf32>
    %85 = math.exp %84 : vector<8x8xf32>
    %cst_31 = arith.constant dense<0.000000e+00> : vector<8xf32>
    %86 = vector.multi_reduction <add>, %85, %cst_31 [1] : vector<8x8xf32> to vector<8xf32>
    %87 = vector.shape_cast %86 : vector<8xf32> to vector<8x1xf32>
    %88 = vector.broadcast %87 : vector<8x1xf32> to vector<8x8xf32>
    %89 = arith.divf %85, %88 : vector<8x8xf32>
    %cst_32 = arith.constant dense<0.000000e+00> : vector<8x16xf32>
    %90 = tpu.matmul %89, %75, %cst_32 {dimension_numbers = #tpu.dot_dimension_numbers<[1], [0], [0], [1], [0, 0, 1, 1], [], []>} : vector<8x8xf32>, vector<8x16xf32>, vector<8x16xf32> -> vector<8x16xf32>
    %91 = vector.extract_strided_slice %31 {offsets = [8, 16], sizes = [8, 16], strides = [1, 1]} : vector<16x32xf32> to vector<8x16xf32>
    %92 = vector.extract_strided_slice %32 {offsets = [8, 16], sizes = [8, 16], strides = [1, 1]} : vector<16x32xf32> to vector<8x16xf32>
    %93 = vector.extract_strided_slice %33 {offsets = [8, 16], sizes = [8, 16], strides = [1, 1]} : vector<16x32xf32> to vector<8x16xf32>
    %cst_33 = arith.constant dense<0.000000e+00> : vector<8x8xf32>
    %94 = tpu.matmul %91, %92, %cst_33 {dimension_numbers = #tpu.dot_dimension_numbers<[1], [1], [0], [0], [0, 0, 1, 0], [], []>} : vector<8x16xf32>, vector<8x16xf32>, vector<8x8xf32> -> vector<8x8xf32>
    %cst_34 = arith.constant 2.500000e-01 : f32
    %95 = vector.broadcast %cst_34 : f32 to vector<8x8xf32>
    %96 = arith.mulf %94, %95 : vector<8x8xf32>
    %97 = vector.broadcast %72 : vector<1x8xf32> to vector<8x8xf32>
    %98 = arith.addf %96, %97 : vector<8x8xf32>
    %cst_35 = arith.constant dense<0xFF800000> : vector<8xf32>
    %99 = vector.multi_reduction <maximumf>, %98, %cst_35 [1] : vector<8x8xf32> to vector<8xf32>
    %100 = vector.shape_cast %99 : vector<8xf32> to vector<8x1xf32>
    %101 = vector.broadcast %100 : vector<8x1xf32> to vector<8x8xf32>
    %102 = arith.subf %98, %101 : vector<8x8xf32>
    %103 = math.exp %102 : vector<8x8xf32>
    %cst_36 = arith.constant dense<0.000000e+00> : vector<8xf32>
    %104 = vector.multi_reduction <add>, %103, %cst_36 [1] : vector<8x8xf32> to vector<8xf32>
    %105 = vector.shape_cast %104 : vector<8xf32> to vector<8x1xf32>
    %106 = vector.broadcast %105 : vector<8x1xf32> to vector<8x8xf32>
    %107 = arith.divf %103, %106 : vector<8x8xf32>
    %cst_37 = arith.constant dense<0.000000e+00> : vector<8x16xf32>
    %108 = tpu.matmul %107, %93, %cst_37 {dimension_numbers = #tpu.dot_dimension_numbers<[1], [0], [0], [1], [0, 0, 1, 1], [], []>} : vector<8x8xf32>, vector<8x16xf32>, vector<8x16xf32> -> vector<8x16xf32>
    %109 = tpu.concatenate %90, %108 in 1 : vector<8x16xf32>, vector<8x16xf32> -> vector<8x32xf32>
    %110 = tpu.concatenate %71, %109 in 0 : vector<8x32xf32>, vector<8x32xf32> -> vector<16x32xf32>
    %c0_38 = arith.constant 0 : index
    %c0_39 = arith.constant 0 : index
    %c0_40 = arith.constant 0 : index
    %111 = vector.load %arg4[%c0_38, %c0_39, %c0_40] : memref<2x32x32xf32, #tpu.memory_space<vmem>>, vector<1x32x32xf32>
    %112 = vector.shape_cast %111 : vector<1x32x32xf32> to vector<32x32xf32>
    %cst_41 = arith.constant dense<0.000000e+00> : vector<16x32xf32>
    %113 = tpu.matmul %110, %112, %cst_41 {dimension_numbers = #tpu.dot_dimension_numbers<[1], [0], [0], [1], [0, 0, 1, 1], [], []>} : vector<16x32xf32>, vector<32x32xf32>, vector<16x32xf32> -> vector<16x32xf32>
    %c0_42 = arith.constant 0 : index
    %c0_43 = arith.constant 0 : index
    %c0_44 = arith.constant 0 : index
    %114 = vector.load %arg5[%c0_42, %c0_43, %c0_44] : memref<2x1x32xf32, #tpu.memory_space<vmem>>, vector<1x1x32xf32>
    %115 = vector.shape_cast %114 : vector<1x1x32xf32> to vector<1x32xf32>
    %116 = vector.broadcast %115 : vector<1x32xf32> to vector<16x32xf32>
    %117 = arith.addf %113, %116 : vector<16x32xf32>
    %118 = arith.addf %117, %23 : vector<16x32xf32>
    %c0_45 = arith.constant 0 : index
    %c0_46 = arith.constant 0 : index
    %c0_47 = arith.constant 0 : index
    %119 = vector.load %arg6[%c0_45, %c0_46, %c0_47] : memref<2x1x32xf32, #tpu.memory_space<vmem>>, vector<1x1x32xf32>
    %120 = vector.shape_cast %119 : vector<1x1x32xf32> to vector<1x32xf32>
    %c0_48 = arith.constant 0 : index
    %c0_49 = arith.constant 0 : index
    %c0_50 = arith.constant 0 : index
    %121 = vector.load %arg7[%c0_48, %c0_49, %c0_50] : memref<2x1x32xf32, #tpu.memory_space<vmem>>, vector<1x1x32xf32>
    %122 = vector.shape_cast %121 : vector<1x1x32xf32> to vector<1x32xf32>
    %cst_51 = arith.constant dense<0.000000e+00> : vector<16xf32>
    %123 = vector.multi_reduction <add>, %118, %cst_51 [1] : vector<16x32xf32> to vector<16xf32>
    %124 = vector.shape_cast %123 : vector<16xf32> to vector<16x1xf32>
    %cst_52 = arith.constant 3.200000e+01 : f32
    %125 = vector.broadcast %cst_52 : f32 to vector<16x1xf32>
    %126 = arith.divf %124, %125 : vector<16x1xf32>
    %127 = vector.broadcast %126 : vector<16x1xf32> to vector<16x32xf32>
    %128 = arith.subf %118, %127 : vector<16x32xf32>
    %129 = arith.mulf %128, %128 : vector<16x32xf32>
    %cst_53 = arith.constant dense<0.000000e+00> : vector<16xf32>
    %130 = vector.multi_reduction <add>, %129, %cst_53 [1] : vector<16x32xf32> to vector<16xf32>
    %131 = vector.shape_cast %130 : vector<16xf32> to vector<16x1xf32>
    %cst_54 = arith.constant 3.200000e+01 : f32
    %132 = vector.broadcast %cst_54 : f32 to vector<16x1xf32>
    %133 = arith.divf %131, %132 : vector<16x1xf32>
    %cst_55 = arith.constant 9.99999996E-13 : f32
    %134 = vector.broadcast %cst_55 : f32 to vector<16x1xf32>
    %135 = arith.addf %133, %134 : vector<16x1xf32>
    %136 = math.rsqrt %135 : vector<16x1xf32>
    %137 = vector.broadcast %136 : vector<16x1xf32> to vector<16x32xf32>
    %138 = arith.mulf %128, %137 : vector<16x32xf32>
    %139 = vector.broadcast %120 : vector<1x32xf32> to vector<16x32xf32>
    %140 = arith.mulf %138, %139 : vector<16x32xf32>
    %141 = vector.broadcast %122 : vector<1x32xf32> to vector<16x32xf32>
    %142 = arith.addf %140, %141 : vector<16x32xf32>
    %c0_56 = arith.constant 0 : index
    %c0_57 = arith.constant 0 : index
    %c0_58 = arith.constant 0 : index
    %143 = vector.load %arg8[%c0_56, %c0_57, %c0_58] : memref<2x32x64xf32, #tpu.memory_space<vmem>>, vector<1x32x64xf32>
    %144 = vector.shape_cast %143 : vector<1x32x64xf32> to vector<32x64xf32>
    %cst_59 = arith.constant dense<0.000000e+00> : vector<16x64xf32>
    %145 = tpu.matmul %142, %144, %cst_59 {dimension_numbers = #tpu.dot_dimension_numbers<[1], [0], [0], [1], [0, 0, 1, 1], [], []>} : vector<16x32xf32>, vector<32x64xf32>, vector<16x64xf32> -> vector<16x64xf32>
    %c0_60 = arith.constant 0 : index
    %c0_61 = arith.constant 0 : index
    %c0_62 = arith.constant 0 : index
    %146 = vector.load %arg9[%c0_60, %c0_61, %c0_62] : memref<2x1x64xf32, #tpu.memory_space<vmem>>, vector<1x1x64xf32>
    %147 = vector.shape_cast %146 : vector<1x1x64xf32> to vector<1x64xf32>
    %148 = vector.broadcast %147 : vector<1x64xf32> to vector<16x64xf32>
    %149 = arith.addf %145, %148 : vector<16x64xf32>
    %cst_63 = arith.constant 5.000000e-01 : f32
    %150 = vector.broadcast %cst_63 : f32 to vector<16x64xf32>
    %151 = arith.mulf %150, %149 : vector<16x64xf32>
    %cst_64 = arith.constant 4.471500e-02 : f32
    %152 = vector.broadcast %cst_64 : f32 to vector<16x64xf32>
    %153 = arith.mulf %152, %149 : vector<16x64xf32>
    %154 = arith.mulf %153, %149 : vector<16x64xf32>
    %155 = arith.mulf %154, %149 : vector<16x64xf32>
    %156 = arith.addf %149, %155 : vector<16x64xf32>
    %cst_65 = arith.constant 0.797884583 : f32
    %157 = vector.broadcast %cst_65 : f32 to vector<16x64xf32>
    %158 = arith.mulf %157, %156 : vector<16x64xf32>
    %159 = math.tanh %158 : vector<16x64xf32>
    %cst_66 = arith.constant 1.000000e+00 : f32
    %160 = vector.broadcast %cst_66 : f32 to vector<16x64xf32>
    %161 = arith.addf %160, %159 : vector<16x64xf32>
    %162 = arith.mulf %151, %161 : vector<16x64xf32>
    %c0_67 = arith.constant 0 : index
    %c0_68 = arith.constant 0 : index
    %c0_69 = arith.constant 0 : index
    %163 = vector.load %arg10[%c0_67, %c0_68, %c0_69] : memref<2x64x32xf32, #tpu.memory_space<vmem>>, vector<1x64x32xf32>
    %164 = vector.shape_cast %163 : vector<1x64x32xf32> to vector<64x32xf32>
    %cst_70 = arith.constant dense<0.000000e+00> : vector<16x32xf32>
    %165 = tpu.matmul %162, %164, %cst_70 {dimension_numbers = #tpu.dot_dimension_numbers<[1], [0], [0], [1], [0, 0, 1, 1], [], []>} : vector<16x64xf32>, vector<64x32xf32>, vector<16x32xf32> -> vector<16x32xf32>
    %c0_71 = arith.constant 0 : index
    %c0_72 = arith.constant 0 : index
    %c0_73 = arith.constant 0 : index
    %166 = vector.load %arg11[%c0_71, %c0_72, %c0_73] : memref<2x1x32xf32, #tpu.memory_space<vmem>>, vector<1x1x32xf32>
    %167 = vector.shape_cast %166 : vector<1x1x32xf32> to vector<1x32xf32>
    %168 = vector.broadcast %167 : vector<1x32xf32> to vector<16x32xf32>
    %169 = arith.addf %165, %168 : vector<16x32xf32>
    %170 = arith.addf %169, %142 : vector<16x32xf32>
    %c0_74 = arith.constant 0 : index
    %c0_75 = arith.constant 0 : index
    %c0_76 = arith.constant 0 : index
    %171 = vector.load %arg12[%c0_74, %c0_75, %c0_76] : memref<2x1x32xf32, #tpu.memory_space<vmem>>, vector<1x1x32xf32>
    %172 = vector.shape_cast %171 : vector<1x1x32xf32> to vector<1x32xf32>
    %c0_77 = arith.constant 0 : index
    %c0_78 = arith.constant 0 : index
    %c0_79 = arith.constant 0 : index
    %173 = vector.load %arg13[%c0_77, %c0_78, %c0_79] : memref<2x1x32xf32, #tpu.memory_space<vmem>>, vector<1x1x32xf32>
    %174 = vector.shape_cast %173 : vector<1x1x32xf32> to vector<1x32xf32>
    %cst_80 = arith.constant dense<0.000000e+00> : vector<16xf32>
    %175 = vector.multi_reduction <add>, %170, %cst_80 [1] : vector<16x32xf32> to vector<16xf32>
    %176 = vector.shape_cast %175 : vector<16xf32> to vector<16x1xf32>
    %cst_81 = arith.constant 3.200000e+01 : f32
    %177 = vector.broadcast %cst_81 : f32 to vector<16x1xf32>
    %178 = arith.divf %176, %177 : vector<16x1xf32>
    %179 = vector.broadcast %178 : vector<16x1xf32> to vector<16x32xf32>
    %180 = arith.subf %170, %179 : vector<16x32xf32>
    %181 = arith.mulf %180, %180 : vector<16x32xf32>
    %cst_82 = arith.constant dense<0.000000e+00> : vector<16xf32>
    %182 = vector.multi_reduction <add>, %181, %cst_82 [1] : vector<16x32xf32> to vector<16xf32>
    %183 = vector.shape_cast %182 : vector<16xf32> to vector<16x1xf32>
    %cst_83 = arith.constant 3.200000e+01 : f32
    %184 = vector.broadcast %cst_83 : f32 to vector<16x1xf32>
    %185 = arith.divf %183, %184 : vector<16x1xf32>
    %cst_84 = arith.constant 9.99999996E-13 : f32
    %186 = vector.broadcast %cst_84 : f32 to vector<16x1xf32>
    %187 = arith.addf %185, %186 : vector<16x1xf32>
    %188 = math.rsqrt %187 : vector<16x1xf32>
    %189 = vector.broadcast %188 : vector<16x1xf32> to vector<16x32xf32>
    %190 = arith.mulf %180, %189 : vector<16x32xf32>
    %191 = vector.broadcast %172 : vector<1x32xf32> to vector<16x32xf32>
    %192 = arith.mulf %190, %191 : vector<16x32xf32>
    %193 = vector.broadcast %174 : vector<1x32xf32> to vector<16x32xf32>
    %194 = arith.addf %192, %193 : vector<16x32xf32>
    %c1 = arith.constant 1 : index
    %c0_85 = arith.constant 0 : index
    %c0_86 = arith.constant 0 : index
    %195 = vector.load %arg2[%c1, %c0_85, %c0_86] : memref<2x32x96xf32, #tpu.memory_space<vmem>>, vector<1x32x96xf32>
    %196 = vector.shape_cast %195 : vector<1x32x96xf32> to vector<32x96xf32>
    %cst_87 = arith.constant dense<0.000000e+00> : vector<16x96xf32>
    %197 = tpu.matmul %194, %196, %cst_87 {dimension_numbers = #tpu.dot_dimension_numbers<[1], [0], [0], [1], [0, 0, 1, 1], [], []>} : vector<16x32xf32>, vector<32x96xf32>, vector<16x96xf32> -> vector<16x96xf32>
    %c1_88 = arith.constant 1 : index
    %c0_89 = arith.constant 0 : index
    %c0_90 = arith.constant 0 : index
    %198 = vector.load %arg3[%c1_88, %c0_89, %c0_90] : memref<2x1x96xf32, #tpu.memory_space<vmem>>, vector<1x1x96xf32>
    %199 = vector.shape_cast %198 : vector<1x1x96xf32> to vector<1x96xf32>
    %200 = vector.broadcast %199 : vector<1x96xf32> to vector<16x96xf32>
    %201 = arith.addf %197, %200 : vector<16x96xf32>
    %202 = vector.extract_strided_slice %201 {offsets = [0, 0], sizes = [16, 32], strides = [1, 1]} : vector<16x96xf32> to vector<16x32xf32>
    %203 = vector.extract_strided_slice %201 {offsets = [0, 32], sizes = [16, 32], strides = [1, 1]} : vector<16x96xf32> to vector<16x32xf32>
    %204 = vector.extract_strided_slice %201 {offsets = [0, 64], sizes = [16, 32], strides = [1, 1]} : vector<16x96xf32> to vector<16x32xf32>
    %205 = vector.extract_strided_slice %1 {offsets = [0, 0], sizes = [1, 8], strides = [1, 1]} : vector<2x8xf32> to vector<1x8xf32>
    %206 = vector.extract_strided_slice %202 {offsets = [0, 0], sizes = [8, 16], strides = [1, 1]} : vector<16x32xf32> to vector<8x16xf32>
    %207 = vector.extract_strided_slice %203 {offsets = [0, 0], sizes = [8, 16], strides = [1, 1]} : vector<16x32xf32> to vector<8x16xf32>
    %208 = vector.extract_strided_slice %204 {offsets = [0, 0], sizes = [8, 16], strides = [1, 1]} : vector<16x32xf32> to vector<8x16xf32>
    %cst_91 = arith.constant dense<0.000000e+00> : vector<8x8xf32>
    %209 = tpu.matmul %206, %207, %cst_91 {dimension_numbers = #tpu.dot_dimension_numbers<[1], [1], [0], [0], [0, 0, 1, 0], [], []>} : vector<8x16xf32>, vector<8x16xf32>, vector<8x8xf32> -> vector<8x8xf32>
    %cst_92 = arith.constant 2.500000e-01 : f32
    %210 = vector.broadcast %cst_92 : f32 to vector<8x8xf32>
    %211 = arith.mulf %209, %210 : vector<8x8xf32>
    %212 = vector.broadcast %205 : vector<1x8xf32> to vector<8x8xf32>
    %213 = arith.addf %211, %212 : vector<8x8xf32>
    %cst_93 = arith.constant dense<0xFF800000> : vector<8xf32>
    %214 = vector.multi_reduction <maximumf>, %213, %cst_93 [1] : vector<8x8xf32> to vector<8xf32>
    %215 = vector.shape_cast %214 : vector<8xf32> to vector<8x1xf32>
    %216 = vector.broadcast %215 : vector<8x1xf32> to vector<8x8xf32>
    %217 = arith.subf %213, %216 : vector<8x8xf32>
    %218 = math.exp %217 : vector<8x8xf32>
    %cst_94 = arith.constant dense<0.000000e+00> : vector<8xf32>
    %219 = vector.multi_reduction <add>, %218, %cst_94 [1] : vector<8x8xf32> to vector<8xf32>
    %220 = vector.shape_cast %219 : vector<8xf32> to vector<8x1xf32>
    %221 = vector.broadcast %220 : vector<8x1xf32> to vector<8x8xf32>
    %222 = arith.divf %218, %221 : vector<8x8xf32>
    %cst_95 = arith.constant dense<0.000000e+00> : vector<8x16xf32>
    %223 = tpu.matmul %222, %208, %cst_95 {dimension_numbers = #tpu.dot_dimension_numbers<[1], [0], [0], [1], [0, 0, 1, 1], [], []>} : vector<8x8xf32>, vector<8x16xf32>, vector<8x16xf32> -> vector<8x16xf32>
    %224 = vector.extract_strided_slice %202 {offsets = [0, 16], sizes = [8, 16], strides = [1, 1]} : vector<16x32xf32> to vector<8x16xf32>
    %225 = vector.extract_strided_slice %203 {offsets = [0, 16], sizes = [8, 16], strides = [1, 1]} : vector<16x32xf32> to vector<8x16xf32>
    %226 = vector.extract_strided_slice %204 {offsets = [0, 16], sizes = [8, 16], strides = [1, 1]} : vector<16x32xf32> to vector<8x16xf32>
    %cst_96 = arith.constant dense<0.000000e+00> : vector<8x8xf32>
    %227 = tpu.matmul %224, %225, %cst_96 {dimension_numbers = #tpu.dot_dimension_numbers<[1], [1], [0], [0], [0, 0, 1, 0], [], []>} : vector<8x16xf32>, vector<8x16xf32>, vector<8x8xf32> -> vector<8x8xf32>
    %cst_97 = arith.constant 2.500000e-01 : f32
    %228 = vector.broadcast %cst_97 : f32 to vector<8x8xf32>
    %229 = arith.mulf %227, %228 : vector<8x8xf32>
    %230 = vector.broadcast %205 : vector<1x8xf32> to vector<8x8xf32>
    %231 = arith.addf %229, %230 : vector<8x8xf32>
    %cst_98 = arith.constant dense<0xFF800000> : vector<8xf32>
    %232 = vector.multi_reduction <maximumf>, %231, %cst_98 [1] : vector<8x8xf32> to vector<8xf32>
    %233 = vector.shape_cast %232 : vector<8xf32> to vector<8x1xf32>
    %234 = vector.broadcast %233 : vector<8x1xf32> to vector<8x8xf32>
    %235 = arith.subf %231, %234 : vector<8x8xf32>
    %236 = math.exp %235 : vector<8x8xf32>
    %cst_99 = arith.constant dense<0.000000e+00> : vector<8xf32>
    %237 = vector.multi_reduction <add>, %236, %cst_99 [1] : vector<8x8xf32> to vector<8xf32>
    %238 = vector.shape_cast %237 : vector<8xf32> to vector<8x1xf32>
    %239 = vector.broadcast %238 : vector<8x1xf32> to vector<8x8xf32>
    %240 = arith.divf %236, %239 : vector<8x8xf32>
    %cst_100 = arith.constant dense<0.000000e+00> : vector<8x16xf32>
    %241 = tpu.matmul %240, %226, %cst_100 {dimension_numbers = #tpu.dot_dimension_numbers<[1], [0], [0], [1], [0, 0, 1, 1], [], []>} : vector<8x8xf32>, vector<8x16xf32>, vector<8x16xf32> -> vector<8x16xf32>
    %242 = tpu.concatenate %223, %241 in 1 : vector<8x16xf32>, vector<8x16xf32> -> vector<8x32xf32>
    %243 = vector.extract_strided_slice %1 {offsets = [1, 0], sizes = [1, 8], strides = [1, 1]} : vector<2x8xf32> to vector<1x8xf32>
    %244 = vector.extract_strided_slice %202 {offsets = [8, 0], sizes = [8, 16], strides = [1, 1]} : vector<16x32xf32> to vector<8x16xf32>
    %245 = vector.extract_strided_slice %203 {offsets = [8, 0], sizes = [8, 16], strides = [1, 1]} : vector<16x32xf32> to vector<8x16xf32>
    %246 = vector.extract_strided_slice %204 {offsets = [8, 0], sizes = [8, 16], strides = [1, 1]} : vector<16x32xf32> to vector<8x16xf32>
    %cst_101 = arith.constant dense<0.000000e+00> : vector<8x8xf32>
    %247 = tpu.matmul %244, %245, %cst_101 {dimension_numbers = #tpu.dot_dimension_numbers<[1], [1], [0], [0], [0, 0, 1, 0], [], []>} : vector<8x16xf32>, vector<8x16xf32>, vector<8x8xf32> -> vector<8x8xf32>
    %cst_102 = arith.constant 2.500000e-01 : f32
    %248 = vector.broadcast %cst_102 : f32 to vector<8x8xf32>
    %249 = arith.mulf %247, %248 : vector<8x8xf32>
    %250 = vector.broadcast %243 : vector<1x8xf32> to vector<8x8xf32>
    %251 = arith.addf %249, %250 : vector<8x8xf32>
    %cst_103 = arith.constant dense<0xFF800000> : vector<8xf32>
    %252 = vector.multi_reduction <maximumf>, %251, %cst_103 [1] : vector<8x8xf32> to vector<8xf32>
    %253 = vector.shape_cast %252 : vector<8xf32> to vector<8x1xf32>
    %254 = vector.broadcast %253 : vector<8x1xf32> to vector<8x8xf32>
    %255 = arith.subf %251, %254 : vector<8x8xf32>
    %256 = math.exp %255 : vector<8x8xf32>
    %cst_104 = arith.constant dense<0.000000e+00> : vector<8xf32>
    %257 = vector.multi_reduction <add>, %256, %cst_104 [1] : vector<8x8xf32> to vector<8xf32>
    %258 = vector.shape_cast %257 : vector<8xf32> to vector<8x1xf32>
    %259 = vector.broadcast %258 : vector<8x1xf32> to vector<8x8xf32>
    %260 = arith.divf %256, %259 : vector<8x8xf32>
    %cst_105 = arith.constant dense<0.000000e+00> : vector<8x16xf32>
    %261 = tpu.matmul %260, %246, %cst_105 {dimension_numbers = #tpu.dot_dimension_numbers<[1], [0], [0], [1], [0, 0, 1, 1], [], []>} : vector<8x8xf32>, vector<8x16xf32>, vector<8x16xf32> -> vector<8x16xf32>
    %262 = vector.extract_strided_slice %202 {offsets = [8, 16], sizes = [8, 16], strides = [1, 1]} : vector<16x32xf32> to vector<8x16xf32>
    %263 = vector.extract_strided_slice %203 {offsets = [8, 16], sizes = [8, 16], strides = [1, 1]} : vector<16x32xf32> to vector<8x16xf32>
    %264 = vector.extract_strided_slice %204 {offsets = [8, 16], sizes = [8, 16], strides = [1, 1]} : vector<16x32xf32> to vector<8x16xf32>
    %cst_106 = arith.constant dense<0.000000e+00> : vector<8x8xf32>
    %265 = tpu.matmul %262, %263, %cst_106 {dimension_numbers = #tpu.dot_dimension_numbers<[1], [1], [0], [0], [0, 0, 1, 0], [], []>} : vector<8x16xf32>, vector<8x16xf32>, vector<8x8xf32> -> vector<8x8xf32>
    %cst_107 = arith.constant 2.500000e-01 : f32
    %266 = vector.broadcast %cst_107 : f32 to vector<8x8xf32>
    %267 = arith.mulf %265, %266 : vector<8x8xf32>
    %268 = vector.broadcast %243 : vector<1x8xf32> to vector<8x8xf32>
    %269 = arith.addf %267, %268 : vector<8x8xf32>
    %cst_108 = arith.constant dense<0xFF800000> : vector<8xf32>
    %270 = vector.multi_reduction <maximumf>, %269, %cst_108 [1] : vector<8x8xf32> to vector<8xf32>
    %271 = vector.shape_cast %270 : vector<8xf32> to vector<8x1xf32>
    %272 = vector.broadcast %271 : vector<8x1xf32> to vector<8x8xf32>
    %273 = arith.subf %269, %272 : vector<8x8xf32>
    %274 = math.exp %273 : vector<8x8xf32>
    %cst_109 = arith.constant dense<0.000000e+00> : vector<8xf32>
    %275 = vector.multi_reduction <add>, %274, %cst_109 [1] : vector<8x8xf32> to vector<8xf32>
    %276 = vector.shape_cast %275 : vector<8xf32> to vector<8x1xf32>
    %277 = vector.broadcast %276 : vector<8x1xf32> to vector<8x8xf32>
    %278 = arith.divf %274, %277 : vector<8x8xf32>
    %cst_110 = arith.constant dense<0.000000e+00> : vector<8x16xf32>
    %279 = tpu.matmul %278, %264, %cst_110 {dimension_numbers = #tpu.dot_dimension_numbers<[1], [0], [0], [1], [0, 0, 1, 1], [], []>} : vector<8x8xf32>, vector<8x16xf32>, vector<8x16xf32> -> vector<8x16xf32>
    %280 = tpu.concatenate %261, %279 in 1 : vector<8x16xf32>, vector<8x16xf32> -> vector<8x32xf32>
    %281 = tpu.concatenate %242, %280 in 0 : vector<8x32xf32>, vector<8x32xf32> -> vector<16x32xf32>
    %c1_111 = arith.constant 1 : index
    %c0_112 = arith.constant 0 : index
    %c0_113 = arith.constant 0 : index
    %282 = vector.load %arg4[%c1_111, %c0_112, %c0_113] : memref<2x32x32xf32, #tpu.memory_space<vmem>>, vector<1x32x32xf32>
    %283 = vector.shape_cast %282 : vector<1x32x32xf32> to vector<32x32xf32>
    %cst_114 = arith.constant dense<0.000000e+00> : vector<16x32xf32>
    %284 = tpu.matmul %281, %283, %cst_114 {dimension_numbers = #tpu.dot_dimension_numbers<[1], [0], [0], [1], [0, 0, 1, 1], [], []>} : vector<16x32xf32>, vector<32x32xf32>, vector<16x32xf32> -> vector<16x32xf32>
    %c1_115 = arith.constant 1 : index
    %c0_116 = arith.constant 0 : index
    %c0_117 = arith.constant 0 : index
    %285 = vector.load %arg5[%c1_115, %c0_116, %c0_117] : memref<2x1x32xf32, #tpu.memory_space<vmem>>, vector<1x1x32xf32>
    %286 = vector.shape_cast %285 : vector<1x1x32xf32> to vector<1x32xf32>
    %287 = vector.broadcast %286 : vector<1x32xf32> to vector<16x32xf32>
    %288 = arith.addf %284, %287 : vector<16x32xf32>
    %289 = arith.addf %288, %194 : vector<16x32xf32>
    %c1_118 = arith.constant 1 : index
    %c0_119 = arith.constant 0 : index
    %c0_120 = arith.constant 0 : index
    %290 = vector.load %arg6[%c1_118, %c0_119, %c0_120] : memref<2x1x32xf32, #tpu.memory_space<vmem>>, vector<1x1x32xf32>
    %291 = vector.shape_cast %290 : vector<1x1x32xf32> to vector<1x32xf32>
    %c1_121 = arith.constant 1 : index
    %c0_122 = arith.constant 0 : index
    %c0_123 = arith.constant 0 : index
    %292 = vector.load %arg7[%c1_121, %c0_122, %c0_123] : memref<2x1x32xf32, #tpu.memory_space<vmem>>, vector<1x1x32xf32>
    %293 = vector.shape_cast %292 : vector<1x1x32xf32> to vector<1x32xf32>
    %cst_124 = arith.constant dense<0.000000e+00> : vector<16xf32>
    %294 = vector.multi_reduction <add>, %289, %cst_124 [1] : vector<16x32xf32> to vector<16xf32>
    %295 = vector.shape_cast %294 : vector<16xf32> to vector<16x1xf32>
    %cst_125 = arith.constant 3.200000e+01 : f32
    %296 = vector.broadcast %cst_125 : f32 to vector<16x1xf32>
    %297 = arith.divf %295, %296 : vector<16x1xf32>
    %298 = vector.broadcast %297 : vector<16x1xf32> to vector<16x32xf32>
    %299 = arith.subf %289, %298 : vector<16x32xf32>
    %300 = arith.mulf %299, %299 : vector<16x32xf32>
    %cst_126 = arith.constant dense<0.000000e+00> : vector<16xf32>
    %301 = vector.multi_reduction <add>, %300, %cst_126 [1] : vector<16x32xf32> to vector<16xf32>
    %302 = vector.shape_cast %301 : vector<16xf32> to vector<16x1xf32>
    %cst_127 = arith.constant 3.200000e+01 : f32
    %303 = vector.broadcast %cst_127 : f32 to vector<16x1xf32>
    %304 = arith.divf %302, %303 : vector<16x1xf32>
    %cst_128 = arith.constant 9.99999996E-13 : f32
    %305 = vector.broadcast %cst_128 : f32 to vector<16x1xf32>
    %306 = arith.addf %304, %305 : vector<16x1xf32>
    %307 = math.rsqrt %306 : vector<16x1xf32>
    %308 = vector.broadcast %307 : vector<16x1xf32> to vector<16x32xf32>
    %309 = arith.mulf %299, %308 : vector<16x32xf32>
    %310 = vector.broadcast %291 : vector<1x32xf32> to vector<16x32xf32>
    %311 = arith.mulf %309, %310 : vector<16x32xf32>
    %312 = vector.broadcast %293 : vector<1x32xf32> to vector<16x32xf32>
    %313 = arith.addf %311, %312 : vector<16x32xf32>
    %c1_129 = arith.constant 1 : index
    %c0_130 = arith.constant 0 : index
    %c0_131 = arith.constant 0 : index
    %314 = vector.load %arg8[%c1_129, %c0_130, %c0_131] : memref<2x32x64xf32, #tpu.memory_space<vmem>>, vector<1x32x64xf32>
    %315 = vector.shape_cast %314 : vector<1x32x64xf32> to vector<32x64xf32>
    %cst_132 = arith.constant dense<0.000000e+00> : vector<16x64xf32>
    %316 = tpu.matmul %313, %315, %cst_132 {dimension_numbers = #tpu.dot_dimension_numbers<[1], [0], [0], [1], [0, 0, 1, 1], [], []>} : vector<16x32xf32>, vector<32x64xf32>, vector<16x64xf32> -> vector<16x64xf32>
    %c1_133 = arith.constant 1 : index
    %c0_134 = arith.constant 0 : index
    %c0_135 = arith.constant 0 : index
    %317 = vector.load %arg9[%c1_133, %c0_134, %c0_135] : memref<2x1x64xf32, #tpu.memory_space<vmem>>, vector<1x1x64xf32>
    %318 = vector.shape_cast %317 : vector<1x1x64xf32> to vector<1x64xf32>
    %319 = vector.broadcast %318 : vector<1x64xf32> to vector<16x64xf32>
    %320 = arith.addf %316, %319 : vector<16x64xf32>
    %cst_136 = arith.constant 5.000000e-01 : f32
    %321 = vector.broadcast %cst_136 : f32 to vector<16x64xf32>
    %322 = arith.mulf %321, %320 : vector<16x64xf32>
    %cst_137 = arith.constant 4.471500e-02 : f32
    %323 = vector.broadcast %cst_137 : f32 to vector<16x64xf32>
    %324 = arith.mulf %323, %320 : vector<16x64xf32>
    %325 = arith.mulf %324, %320 : vector<16x64xf32>
    %326 = arith.mulf %325, %320 : vector<16x64xf32>
    %327 = arith.addf %320, %326 : vector<16x64xf32>
    %cst_138 = arith.constant 0.797884583 : f32
    %328 = vector.broadcast %cst_138 : f32 to vector<16x64xf32>
    %329 = arith.mulf %328, %327 : vector<16x64xf32>
    %330 = math.tanh %329 : vector<16x64xf32>
    %cst_139 = arith.constant 1.000000e+00 : f32
    %331 = vector.broadcast %cst_139 : f32 to vector<16x64xf32>
    %332 = arith.addf %331, %330 : vector<16x64xf32>
    %333 = arith.mulf %322, %332 : vector<16x64xf32>
    %c1_140 = arith.constant 1 : index
    %c0_141 = arith.constant 0 : index
    %c0_142 = arith.constant 0 : index
    %334 = vector.load %arg10[%c1_140, %c0_141, %c0_142] : memref<2x64x32xf32, #tpu.memory_space<vmem>>, vector<1x64x32xf32>
    %335 = vector.shape_cast %334 : vector<1x64x32xf32> to vector<64x32xf32>
    %cst_143 = arith.constant dense<0.000000e+00> : vector<16x32xf32>
    %336 = tpu.matmul %333, %335, %cst_143 {dimension_numbers = #tpu.dot_dimension_numbers<[1], [0], [0], [1], [0, 0, 1, 1], [], []>} : vector<16x64xf32>, vector<64x32xf32>, vector<16x32xf32> -> vector<16x32xf32>
    %c1_144 = arith.constant 1 : index
    %c0_145 = arith.constant 0 : index
    %c0_146 = arith.constant 0 : index
    %337 = vector.load %arg11[%c1_144, %c0_145, %c0_146] : memref<2x1x32xf32, #tpu.memory_space<vmem>>, vector<1x1x32xf32>
    %338 = vector.shape_cast %337 : vector<1x1x32xf32> to vector<1x32xf32>
    %339 = vector.broadcast %338 : vector<1x32xf32> to vector<16x32xf32>
    %340 = arith.addf %336, %339 : vector<16x32xf32>
    %341 = arith.addf %340, %313 : vector<16x32xf32>
    %c1_147 = arith.constant 1 : index
    %c0_148 = arith.constant 0 : index
    %c0_149 = arith.constant 0 : index
    %342 = vector.load %arg12[%c1_147, %c0_148, %c0_149] : memref<2x1x32xf32, #tpu.memory_space<vmem>>, vector<1x1x32xf32>
    %343 = vector.shape_cast %342 : vector<1x1x32xf32> to vector<1x32xf32>
    %c1_150 = arith.constant 1 : index
    %c0_151 = arith.constant 0 : index
    %c0_152 = arith.constant 0 : index
    %344 = vector.load %arg13[%c1_150, %c0_151, %c0_152] : memref<2x1x32xf32, #tpu.memory_space<vmem>>, vector<1x1x32xf32>
    %345 = vector.shape_cast %344 : vector<1x1x32xf32> to vector<1x32xf32>
    %cst_153 = arith.constant dense<0.000000e+00> : vector<16xf32>
    %346 = vector.multi_reduction <add>, %341, %cst_153 [1] : vector<16x32xf32> to vector<16xf32>
    %347 = vector.shape_cast %346 : vector<16xf32> to vector<16x1xf32>
    %cst_154 = arith.constant 3.200000e+01 : f32
    %348 = vector.broadcast %cst_154 : f32 to vector<16x1xf32>
    %349 = arith.divf %347, %348 : vector<16x1xf32>
    %350 = vector.broadcast %349 : vector<16x1xf32> to vector<16x32xf32>
    %351 = arith.subf %341, %350 : vector<16x32xf32>
    %352 = arith.mulf %351, %351 : vector<16x32xf32>
    %cst_155 = arith.constant dense<0.000000e+00> : vector<16xf32>
    %353 = vector.multi_reduction <add>, %352, %cst_155 [1] : vector<16x32xf32> to vector<16xf32>
    %354 = vector.shape_cast %353 : vector<16xf32> to vector<16x1xf32>
    %cst_156 = arith.constant 3.200000e+01 : f32
    %355 = vector.broadcast %cst_156 : f32 to vector<16x1xf32>
    %356 = arith.divf %354, %355 : vector<16x1xf32>
    %cst_157 = arith.constant 9.99999996E-13 : f32
    %357 = vector.broadcast %cst_157 : f32 to vector<16x1xf32>
    %358 = arith.addf %356, %357 : vector<16x1xf32>
    %359 = math.rsqrt %358 : vector<16x1xf32>
    %360 = vector.broadcast %359 : vector<16x1xf32> to vector<16x32xf32>
    %361 = arith.mulf %351, %360 : vector<16x32xf32>
    %362 = vector.broadcast %343 : vector<1x32xf32> to vector<16x32xf32>
    %363 = arith.mulf %361, %362 : vector<16x32xf32>
    %364 = vector.broadcast %345 : vector<1x32xf32> to vector<16x32xf32>
    %365 = arith.addf %363, %364 : vector<16x32xf32>
    %366 = vector.extract_strided_slice %365 {offsets = [0, 0], sizes = [1, 32], strides = [1, 1]} : vector<16x32xf32> to vector<1x32xf32>
    %367 = vector.extract_strided_slice %365 {offsets = [8, 0], sizes = [1, 32], strides = [1, 1]} : vector<16x32xf32> to vector<1x32xf32>
    %368 = tpu.concatenate %366, %367 in 0 : vector<1x32xf32>, vector<1x32xf32> -> vector<2x32xf32>
    %c0_158 = arith.constant 0 : index
    %c0_159 = arith.constant 0 : index
    %369 = vector.load %arg16[%c0_158, %c0_159] : memref<32x32xf32, #tpu.memory_space<vmem>>, vector<32x32xf32>
    %cst_160 = arith.constant dense<0.000000e+00> : vector<2x32xf32>
    %370 = tpu.matmul %368, %369, %cst_160 {dimension_numbers = #tpu.dot_dimension_numbers<[1], [0], [0], [1], [0, 0, 1, 1], [], []>} : vector<2x32xf32>, vector<32x32xf32>, vector<2x32xf32> -> vector<2x32xf32>
    %c0_161 = arith.constant 0 : index
    %c0_162 = arith.constant 0 : index
    %371 = vector.load %arg17[%c0_161, %c0_162] : memref<1x32xf32, #tpu.memory_space<vmem>>, vector<1x32xf32>
    %372 = vector.broadcast %371 : vector<1x32xf32> to vector<2x32xf32>
    %373 = arith.addf %370, %372 : vector<2x32xf32>
    %374 = math.tanh %373 : vector<2x32xf32>
    %c0_163 = arith.constant 0 : index
    %c0_164 = arith.constant 0 : index
    %375 = vector.load %arg18[%c0_163, %c0_164] : memref<32x32xf32, #tpu.memory_space<vmem>>, vector<32x32xf32>
    %cst_165 = arith.constant dense<0.000000e+00> : vector<2x32xf32>
    %376 = tpu.matmul %374, %375, %cst_165 {dimension_numbers = #tpu.dot_dimension_numbers<[1], [0], [0], [1], [0, 0, 1, 1], [], []>} : vector<2x32xf32>, vector<32x32xf32>, vector<2x32xf32> -> vector<2x32xf32>
    %c0_166 = arith.constant 0 : index
    %c0_167 = arith.constant 0 : index
    %377 = vector.load %arg19[%c0_166, %c0_167] : memref<1x32xf32, #tpu.memory_space<vmem>>, vector<1x32xf32>
    %378 = vector.broadcast %377 : vector<1x32xf32> to vector<2x32xf32>
    %379 = arith.addf %376, %378 : vector<2x32xf32>
    %cst_168 = arith.constant 0.000000e+00 : f32
    %380 = vector.broadcast %cst_168 : f32 to vector<2x32xf32>
    %381 = arith.maximumf %379, %380 : vector<2x32xf32>
    %c0_169 = arith.constant 0 : index
    %c0_170 = arith.constant 0 : index
    %382 = vector.load %arg20[%c0_169, %c0_170] : memref<32x4xf32, #tpu.memory_space<vmem>>, vector<32x4xf32>
    %cst_171 = arith.constant dense<0.000000e+00> : vector<2x4xf32>
    %383 = tpu.matmul %381, %382, %cst_171 {dimension_numbers = #tpu.dot_dimension_numbers<[1], [0], [0], [1], [0, 0, 1, 1], [], []>} : vector<2x32xf32>, vector<32x4xf32>, vector<2x4xf32> -> vector<2x4xf32>
    %c0_172 = arith.constant 0 : index
    %c0_173 = arith.constant 0 : index
    %384 = vector.load %arg21[%c0_172, %c0_173] : memref<1x4xf32, #tpu.memory_space<vmem>>, vector<1x4xf32>
    %385 = vector.broadcast %384 : vector<1x4xf32> to vector<2x4xf32>
    %386 = arith.addf %383, %385 : vector<2x4xf32>
    %cst_174 = arith.constant dense<0xFF800000> : vector<2xf32>
    %387 = vector.multi_reduction <maximumf>, %386, %cst_174 [1] : vector<2x4xf32> to vector<2xf32>
    %388 = vector.shape_cast %387 : vector<2xf32> to vector<2x1xf32>
    %389 = vector.broadcast %388 : vector<2x1xf32> to vector<2x4xf32>
    %390 = arith.subf %386, %389 : vector<2x4xf32>
    %391 = math.exp %390 : vector<2x4xf32>
    %cst_175 = arith.constant dense<0.000000e+00> : vector<2xf32>
    %392 = vector.multi_reduction <add>, %391, %cst_175 [1] : vector<2x4xf32> to vector<2xf32>
    %393 = vector.shape_cast %392 : vector<2xf32> to vector<2x1xf32>
    %394 = vector.broadcast %393 : vector<2x1xf32> to vector<2x4xf32>
    %395 = arith.divf %391, %394 : vector<2x4xf32>
    %c0_176 = arith.constant 0 : index
    %c0_177 = arith.constant 0 : index
    %396 = vector.load %arg22[%c0_176, %c0_177] : memref<2x4xf32, #tpu.memory_space<vmem>>, vector<2x4xf32>
    tpu.vector_store %arg22[%c0_176, %c0_177], %395 {strides = array<i32>} : memref<2x4xf32, #tpu.memory_space<vmem>>, vector<2x4xf32>,
    return
  }
}

</mosaic_0001>

<bundles_post_ra>
// kernel: forward.1
= control target key start
LH: loop header
LB: loop body
LE: loop exit
PB: predicated region body
PF: predicated region fallthrough
CT: control target
= control target key end

     0   :  { %s3948_s0 = inlined_call_operand.vmem [shape: f32[16,32], index: 0, kind: input, shape index: {}]   ;;  %s3949_s1 = inlined_call_operand.vmem [shape: f32[2,8], index: 1, kind: input, shape index: {}]   ;;  %s3950_s2 = inlined_call_operand.vmem [shape: f32[2,32,96], index: 2, kind: input, shape index: {}]   ;;  %s3951_s3 = inlined_call_operand.vmem [shape: f32[2,1,96], index: 3, kind: input, shape index: {}]   ;;  %s3952_s4 = inlined_call_operand.vmem [shape: f32[2,32,32], index: 4, kind: input, shape index: {}]   ;;  %s3953_s5 = inlined_call_operand.vmem [shape: f32[2,1,32], index: 5, kind: input, shape index: {}]   ;;  %s3954_s6 = inlined_call_operand.vmem [shape: f32[2,1,32], index: 6, kind: input, shape index: {}]   ;;  %s3955_s7 = inlined_call_operand.vmem [shape: f32[2,1,32], index: 7, kind: input, shape index: {}]   ;;  %s3956_s8 = inlined_call_operand.vmem [shape: f32[2,32,64], index: 8, kind: input, shape index: {}]   ;;  %s3957_s9 = inlined_call_operand.vmem [shape: f32[2,1,64], index: 9, kind: input, shape index: {}]   ;;  %s3958_s10 = inlined_call_operand.vmem [shape: f32[2,64,32], index: 10, kind: input, shape index: {}]   ;;  %s3959_s11 = inlined_call_operand.vmem [shape: f32[2,1,32], index: 11, kind: input, shape index: {}]   ;;  %s3960_s12 = inlined_call_operand.vmem [shape: f32[2,1,32], index: 12, kind: input, shape index: {}]   ;;  %s3961_s13 = inlined_call_operand.vmem [shape: f32[2,1,32], index: 13, kind: input, shape index: {}]   ;;  %s3962_s14 = inlined_call_operand.vmem [shape: f32[1,32], index: 14, kind: input, shape index: {}]   ;;  %s3963_s15 = inlined_call_operand.vmem [shape: f32[1,32], index: 15, kind: input, shape index: {}]   ;;  %s3964_s16 = inlined_call_operand.vmem [shape: f32[32,32], index: 16, kind: input, shape index: {}]   ;;  %s3965_s17 = inlined_call_operand.vmem [shape: f32[1,32], index: 17, kind: input, shape index: {}]   ;;  %s3966_s18 = inlined_call_operand.vmem [shape: f32[32,32], index: 18, kind: input, shape index: {}]   ;;  %s3967_s19 = inlined_call_operand.vmem [shape: f32[1,32], index: 19, kind: input, shape index: {}]   ;;  %s3968_s20 = inlined_call_operand.vmem [shape: f32[32,4], index: 20, kind: input, shape index: {}]   ;;  %s3969_s21 = inlined_call_operand.vmem [shape: f32[1,4], index: 21, kind: input, shape index: {}]   ;;  %s3970_s22 = inlined_call_operand.hbm [shape: f32[2,4], index: 22, kind: output, shape index: {}]  }
   0x1   :  { %3985 = sst [smem:[#allocation5_spill]] %s3948_s0 }
   0x2   :  { %3986 = sst [smem:[#allocation6_spill]] %s3949_s1 }
   0x3   :  { %3987 = sst [smem:[#allocation7_spill]] %s3950_s2 }
   0x4   :  { %3988 = sst [smem:[#allocation8_spill]] %s3951_s3 }
   0x5   :  { %3989 = sst [smem:[#allocation9_spill]] %s3952_s4 }
   0x6   :  { %3990 = sst [smem:[#allocation10_spill]] %s3953_s5 }
   0x7   :  { %3991 = sst [smem:[#allocation11_spill]] %s3954_s6 }
   0x8   :  { %s3992_s29 = sld [smem:[#allocation5_spill]]  ;;  %vm77_vm0 = vcmask 261120  }
   0xe   :  { %v72_v0 = vld [vmem:[%s3992_s29] sm:$0xff]  ;;  %v73_v1 = vld [vmem:[%s3992_s29 + $0x8] sm:$0xff] }
   0xf   :  { %27 = vsyncpa [#allocation3], 0  ;;  %v78_v2 = vsel %vm77_vm0, %v72_v0, 0.0  ;;  %v81_v3 = vsel %vm77_vm0, %v73_v1, 0.0  ;;  %s3993_s1 = sld [smem:[#allocation7_spill]]  ;;  %v3356_v36 = vmov 0.0   ;;  %v292_v45 = vlaneseq }
  0x10   :  { %79 = vadd.xlane.f32.xlu0 %v78_v2  ;;  %v2746_v27 = vld [vmem:[%s3962_s14] ss:$0 sm:$0xff]  ;;  %2952 = vmatprep.subr.mxu1 %v3356_v36  ;;  %vm3357_vm1 = vmmov 0   ;;  %s3994_s30 = sld [smem:[#allocation8_spill]]  ;;  %s3358_s4 = smov 96   ;;  %vm216_vm2 = vcmask 130048  }
  0x11   :  { %v2747_v29 = vld [vmem:[%s3963_s15] ss:$0 sm:$0xff]  ;;  %2954 = vmatprep.mubr.msk.f32.mxu1 %vm3357_vm1, %v3356_v36  ;;  %s3359_s0 = smov 80   ;;  %s3983_s23 = smov 112   ;;  %v293_v46 = vshrl.u32 %v292_v45, 7  ;;  %vm297_vm3 = vcmask 64512  }
  0x12   :  { %s3995_s6 = sld [smem:[#allocation6_spill]]  ;;  %s3979_s25 = smov 64   ;;  %vm1162_vm4 = vcmask 523264   ;;  %vm2463_vm5 = vcmask 1040384   ;;  %vm2719_vm6 = vcmask 25600  }
  0x13   :  { %v294_v47 = vsub.s32 0, %v293_v46  ;;  %v637_v54 = vsub.s32 1, %v293_v46  ;;  %s3981_s26 = smov 48   ;;  %s3996_s3 = sld [smem:[#allocation9_spill]] }
  0x14   :  { %82 = vadd.xlane.f32.xlu0 %v81_v3  ;;  %s3997_s28 = sld [smem:[#allocation10_spill]]  ;;  %s3998_s15 = sld [smem:[#allocation11_spill]] }
  0x15   :  { %v121_v14 = vld [vmem:[%s3993_s1] sm:$0xff]  ;;  %v122_v15 = vld [vmem:[%s3993_s1 + $0x8] sm:$0xff]  ;;  %v123_v16 = vld [vmem:[%s3993_s1 + $0x10] sm:$0xff]  ;;  %s3999_s29 = smov 112   ;;  %s4002_s24 = smov 16  }
  0x16   :  { %v3158_v17 = vpack.c.bf16 %v122_v15, %v121_v14  ;;  %v124_v18 = vld [vmem:[%s3993_s1 + $0x18] sm:$0xff]  ;;  %v2748_v37 = vld [vmem:[%s3994_s30] ss:$0 sm:$0xff] }
  0x17   :  { %v3162_v19 = vpack.c.bf16 %v124_v18, %v123_v16 }
  0x18   :  { %3159 = vmatprep.subr.bf16.mxu0 %v3158_v17  ;;  %v74_v48 = vld [vmem:[%s3995_s6] sm:$0x3]  ;;  %s3977_s6 = smov 16  }
  0x19   :  { %3161 = vmatpush3.bf16.msra.mxu0 %v3158_v17  ;;  %v3553_v49 = vrot.slane %v74_v48, %v294_v47  ;;  %v3557_v56 = vrot.slane %v74_v48, %v637_v54  ;;  %v900_v54 = vld [vmem:[%s3996_s3 + $0x8] sm:$0xff] }
  0x1a   :  { %3163 = vmatprep.subr.bf16.mxu0 %v3162_v19 }
  0x1d   :  { %3165 = vmatpush3.bf16.msra.mxu0 %v3162_v19 }
  0x1e   :  { %2972 = vmatprep.subr.mxu0 %v3356_v36 }
  0x9d   :  { %v80_v4 = vpop.xlane.xlu0 %79 }
  0x9e   :  { %v85_v5 = vmul.f32 0.03125, %v80_v4 }
  0xa0   :  { %v87_v6 = vsub.f32 %v72_v0, %v85_v5 }
  0xa1   :  { %v83_v7 = vpop.xlane.xlu0 %82 }
  0xa2   :  { %v86_v8 = vmul.f32 0.03125, %v83_v7  ;;  %v89_v9 = vmul.f32 %v87_v6, %v87_v6 }
  0xa4   :  { %v88_v10 = vsub.f32 %v73_v1, %v86_v8  ;;  %v91_v11 = vsel %vm77_vm0, %v89_v9, 0.0 }
  0xa5   :  { %92 = vadd.xlane.f32.xlu1 %v91_v11 }
  0xa6   :  { %v90_v12 = vmul.f32 %v88_v10, %v88_v10 }
  0xa8   :  { %v94_v13 = vsel %vm77_vm0, %v90_v12, 0.0 }
  0xa9   :  { %95 = vadd.xlane.f32.xlu1 %v94_v13 }
 0x132   :  { %v93_v20 = vpop.xlane.xlu1 %92 }
 0x133   :  { %v97_v21 = vmul.f32 0.03125, %v93_v20 }
 0x135   :  { %v99_v22 = vadd.f32 1e-12, %v97_v21 }
 0x136   :  { %v96_v23 = vpop.xlane.xlu1 %95 }
 0x137   :  { %3266 = vrsqrt.f32 %v99_v22  ;;  %v98_v24 = vmul.f32 0.03125, %v96_v23 }
 0x139   :  { %v100_v25 = vadd.f32 1e-12, %v98_v24 }
 0x13b   :  { %3268 = vrsqrt.f32 %v100_v25 }
 0x141   :  { %v3267_v26 = vpop.eup %3266 }
 0x142   :  { %v103_v28 = vmul.f32 %v3267_v26, %v87_v6 }
 0x144   :  { %v111_v30 = vmul.f32 %v2746_v27, %v103_v28 }
 0x145   :  { %v3269_v31 = vpop.eup %3268 }
 0x146   :  { %v104_v32 = vmul.f32 %v3269_v31, %v88_v10  ;;  %v3509_v33 = vadd.f32 %v2747_v29, %v111_v30 }
 0x148   :  { %v112_v34 = vmul.f32 %v2746_v27, %v104_v32  ;;  %2949 = vmatprep.mubr.msk.f32.mxu0 %vm77_vm0, %v3509_v33 }
 0x14a   :  { %v3513_v35 = vadd.f32 %v2747_v29, %v112_v34 }
 0x14c   :  { %2950 = vmatmul.mubr.msk.f32.vlgmr.msra.gmra.mrb[0].mxu0 %vm77_vm0, %v3513_v35 }
 0x14d   :  { %2974 = vmatprep.mubr.msk.f32.mxu0 %vm3357_vm1, %v3356_v36 }
 0x21f   :  { %v2951_v38 = vpop.f32.mrb[0].mxu0 }
 0x220   :  { %v204_v39 = vpop.f32.mrb[1].mxu0  ;;  %v3532_v41 = vadd.f32 %v2951_v38, %v2748_v37 }
 0x221   :  { %v3526_v40 = vadd.f32 %v2748_v37, %v204_v39 }
 0x223   :  { %214 = vrot.lane.b32.xlu0 %v3526_v40, %s3358_s4 }
 0x227   :  { %387 = vrot.lane.b32.xlu0 %v3526_v40, %s3359_s0 }
 0x22b   :  { %558 = vrot.lane.b32.xlu0 %v3532_v41, %s3358_s4 }
 0x22f   :  { %727 = vrot.lane.b32.xlu0 %v3532_v41, %s3983_s23 }
 0x295   :  { %v215_v42 = vpop.permute.xlu0 %214 }
 0x296   :  { %2953 = vmatpush3.xpose.msk.msra.mxu1 %vm216_vm2, %v215_v42 }
 0x297   :  { %2957 = vmatprep.subr.mxu1 %v3356_v36 }
 0x299   :  { %2955 = vmatmul.mubr.msk.f32.vlgmr.msra.gmra.mrb[0].mxu1 %vm216_vm2, %v3526_v40  ;;  %v388_v43 = vpop.permute.xlu0 %387 }
 0x29a   :  { %2959 = vmatprep.mubr.msk.f32.mxu1 %vm3357_vm1, %v3356_v36 }
 0x29d   :  { %v559_v44 = vpop.permute.xlu0 %558 }
 0x29e   :  { %2973 = vmatpush3.xpose.msk.msra.mxu0 %vm216_vm2, %v559_v44 }
 0x29f   :  { %2982 = vmatprep.subr.mxu0 %v3356_v36 }
 0x2a1   :  { %2975 = vmatmul.mubr.msk.f32.vlgmr.msra.gmra.mrb[2].mxu0 %vm216_vm2, %v3532_v41  ;;  %v728_v7 = vpop.permute.xlu0 %727 }
 0x2a2   :  { %2984 = vmatprep.mubr.msk.f32.mxu0 %vm3357_vm1, %v3356_v36 }
 0x36c   :  { %v287_v50 = vpop.f32.mrb[0].mxu1 }
 0x36d   :  { %v291_v51 = vmul.f32 0.25, %v287_v50  ;;  %v2956_v52 = vpop.f32.mrb[1].mxu1 }
 0x36f   :  { %v296_v53 = vadd.f32 %v3553_v49, %v291_v51 }
 0x371   :  { %v298_v55 = vsel %vm297_vm3, %v296_v53, -inf }
 0x372   :  { %299 = vmax.xlane.f32.xlu1 %v298_v55 }
 0x374   :  { %v630_v57 = vpop.f32.mrb[2].mxu0 }
 0x375   :  { %v634_v58 = vmul.f32 0.25, %v630_v57  ;;  %v2976_v59 = vpop.f32.mrb[3].mxu0  ;;  %v901_v57 = vld [vmem:[%s3996_s3 + $0x10] sm:$0xff] }
 0x377   :  { %v639_v60 = vadd.f32 %v3557_v56, %v634_v58  ;;  %v902_v58 = vld [vmem:[%s3996_s3 + $0x18] sm:$0xff] }
 0x378   :  { %v3170_v59 = vpack.c.bf16 %v902_v58, %v901_v57  ;;  %v1152_v57 = vld [vmem:[%s3958_s10 + $0x28] sm:$0xff] }
 0x379   :  { %v640_v61 = vsel %vm297_vm3, %v639_v60, -inf }
 0x37a   :  { %641 = vmax.xlane.f32.xlu0 %v640_v61 }
 0x383   :  { %309 = vrot.lane.b32.xlu1 %v3526_v40, %s3979_s25 }
 0x387   :  { %385 = vrot.lane.b32.xlu1 %v3526_v40, %s3983_s23 }
 0x3ff   :  { %v300_v62 = vpop.xlane.xlu1 %299 }
 0x400   :  { %v301_v63 = vsub.f32 %v296_v53, %v300_v62  ;;  %v899_v53 = vld [vmem:[%s3996_s3] sm:$0xff] }
 0x401   :  { %v3166_v55 = vpack.c.bf16 %v900_v54, %v899_v53  ;;  %v1150_v53 = vld [vmem:[%s3958_s10 + $0x18] sm:$0xff] }
 0x402   :  { %v302_v0 = vmul.f32 1.442695, %v301_v63 }
 0x403   :  { %v310_v1 = vpop.permute.xlu1 %309 }
 0x404   :  { %3270 = vpow2.f32 %v302_v0  ;;  %2958 = vmatpush3.msra.mxu1 %v310_v1 }
 0x405   :  { %2962 = vmatprep.subr.mxu1 %v3356_v36 }
 0x407   :  { %v386_v4 = vpop.permute.xlu1 %385  ;;  %v642_v10 = vpop.xlane.xlu0 %641 }
 0x408   :  { %v643_v11 = vsub.f32 %v639_v60, %v642_v10 }
 0x40a   :  { %v644_v15 = vmul.f32 1.442695, %v643_v11 }
 0x40e   :  { %v3271_v2 = vpop.eup %3270 }
 0x40f   :  { %v304_v3 = vsel %vm297_vm3, %v3271_v2, 0.0 }
 0x410   :  { %305 = vadd.xlane.f32.xlu1 %v304_v3 }
 0x421   :  { %729 = vrot.lane.b32.xlu1 %v3532_v41, %s3359_s0 }
 0x49d   :  { %v306_v5 = vpop.xlane.xlu1 %305 }
 0x49e   :  { %3272 = vrcp.f32 %v306_v5 }
 0x49f   :  { %3274 = vpow2.f32 %v644_v15 }
 0x4a1   :  { %v730_v6 = vpop.permute.xlu1 %729 }
 0x4a2   :  { %2983 = vmatpush3.xpose.msk.msra.mxu0 %vm216_vm2, %v730_v6  ;;  %v2763_v6 = vld [vmem:[%s3997_s28] ss:$0 sm:$0xff] }
 0x4a3   :  { %3167 = vmatprep.subr.bf16.mxu0 %v3166_v55 }
 0x4a5   :  { %2985 = vmatmul.mubr.msk.f32.vlgmr.msra.gmra.mrb[4].mxu0 %vm216_vm2, %v728_v7 }
 0x4a6   :  { %3169 = vmatpush3.bf16.msra.mxu0 %v3166_v55  ;;  %v1151_v55 = vld [vmem:[%s3958_s10 + $0x20] sm:$0xff] }
 0x4a7   :  { %3171 = vmatprep.subr.bf16.mxu0 %v3170_v59  ;;  %v3190_v58 = vpack.c.bf16 %v1152_v57, %v1151_v55  ;;  %v2774_v55 = vld [vmem:[%s3960_s12] ss:$0 sm:$0xff] }
 0x4a8   :  { %v3273_v8 = vpop.eup %3272 }
 0x4a9   :  { %v308_v9 = vmul.f32 %v3273_v8, %v3271_v2  ;;  %v3275_v25 = vpop.eup %3274 }
 0x4aa   :  { %v646_v26 = vsel %vm297_vm3, %v3275_v25, 0.0  ;;  %3173 = vmatpush3.bf16.msra.mxu0 %v3170_v59  ;;  %v1153_v59 = vld [vmem:[%s3958_s10 + $0x30] sm:$0xff] }
 0x4ab   :  { %2960 = vmatmul.mubr.msk.f32.vlgmr.msra.gmra.mrb[2].mxu1 %vm297_vm3, %v308_v9 }
 0x4ac   :  { %2963 = vmatpush3.xpose.msk.msra.mxu1 %vm216_vm2, %v388_v43  ;;  %2964 = vmatprep.mubr.msk.f32.mxu1 %vm3357_vm1, %v3356_v36 }
 0x4ad   :  { %2967 = vmatprep.subr.mxu1 %v3356_v36 }
 0x4af   :  { %2965 = vmatmul.mubr.msk.f32.vlgmr.msra.gmra.mrb[4].mxu1 %vm216_vm2, %v386_v4 }
 0x4b0   :  { %2969 = vmatprep.mubr.msk.f32.mxu1 %vm3357_vm1, %v3356_v36 }
 0x578   :  { %v801_v12 = vpop.f32.mrb[4].mxu0 }
 0x579   :  { %v805_v13 = vmul.f32 0.25, %v801_v12  ;;  %v2986_v14 = vpop.f32.mrb[5].mxu0 }
 0x57b   :  { %v806_v16 = vadd.f32 %v805_v13, %v3557_v56 }
 0x57d   :  { %v807_v17 = vsel %vm297_vm3, %v806_v16, -inf }
 0x57e   :  { %v3581_v18 = vpop.f32.mrb[2].mxu1  ;;  %808 = vmax.xlane.f32.xlu0 %v807_v17 }
 0x57f   :  { %v2961_v19 = vpop.f32.mrb[3].mxu1 }
 0x582   :  { %v459_v20 = vpop.f32.mrb[4].mxu1 }
 0x583   :  { %v463_v21 = vmul.f32 0.25, %v459_v20  ;;  %v2966_v22 = vpop.f32.mrb[5].mxu1 }
 0x585   :  { %v464_v23 = vadd.f32 %v463_v21, %v3553_v49 }
 0x587   :  { %v465_v24 = vsel %vm297_vm3, %v464_v23, -inf }
 0x588   :  { %466 = vmax.xlane.f32.xlu1 %v465_v24  ;;  %v1038_v24 = vld [vmem:[%s3956_s8 + $0x8] sm:$0xff] }
 0x58c   :  { %647 = vadd.xlane.f32.xlu1 %v646_v26  ;;  %v1039_v26 = vld [vmem:[%s3956_s8 + $0x10] sm:$0xff] }
 0x59d   :  { %476 = vrot.lane.b32.xlu1 %v3526_v40, %s3981_s26 }
 0x5a1   :  { %818 = vrot.lane.b32.xlu1 %v3532_v41, %s3981_s26 }
 0x60b   :  { %v809_v27 = vpop.xlane.xlu0 %808 }
 0x60c   :  { %v810_v28 = vsub.f32 %v806_v16, %v809_v27  ;;  %v1040_v27 = vld [vmem:[%s3956_s8 + $0x18] sm:$0xff] }
 0x60e   :  { %v811_v29 = vmul.f32 1.442695, %v810_v28  ;;  %v3178_v28 = vpack.c.bf16 %v1040_v27, %v1039_v26 }
 0x610   :  { %3276 = vpow2.f32 %v811_v29 }
 0x615   :  { %v467_v30 = vpop.xlane.xlu1 %466 }
 0x616   :  { %v468_v31 = vsub.f32 %v464_v23, %v467_v30 }
 0x618   :  { %v469_v32 = vmul.f32 1.442695, %v468_v31 }
 0x619   :  { %v648_v34 = vpop.xlane.xlu1 %647 }
 0x61a   :  { %v3277_v37 = vpop.eup %3276  ;;  %3278 = vpow2.f32 %v469_v32 }
 0x61b   :  { %v813_v38 = vsel %vm297_vm3, %v3277_v37, 0.0 }
 0x61c   :  { %814 = vadd.xlane.f32.xlu0 %v813_v38 }
 0x61d   :  { %v477_v39 = vpop.permute.xlu1 %476 }
 0x61e   :  { %2968 = vmatpush3.msra.mxu1 %v477_v39  ;;  %v2766_v39 = vld [vmem:[%s3998_s15] ss:$0 sm:$0xff] }
 0x61f   :  { %2977 = vmatprep.subr.mxu1 %v3356_v36 }
 0x624   :  { %v3279_v40 = vpop.eup %3278 }
 0x625   :  { %v471_v42 = vsel %vm297_vm3, %v3279_v40, 0.0 }
 0x626   :  { %472 = vadd.xlane.f32.xlu0 %v471_v42  ;;  %v2767_v42 = vld [vmem:[%s3955_s7] ss:$0 sm:$0xff] }
 0x63c   :  { %651 = vrot.lane.b32.xlu0 %v3532_v41, %s3979_s25  ;;  %v819_v41 = vpop.permute.xlu1 %818 }
 0x6a9   :  { %v815_v43 = vpop.xlane.xlu0 %814 }
 0x6b3   :  { %v473_v44 = vpop.xlane.xlu0 %472 }
 0x6b4   :  { %3280 = vrcp.f32 %v473_v44 }
 0x6b5   :  { %3282 = vrcp.f32 %v648_v34 }
 0x6b6   :  { %3284 = vrcp.f32 %v815_v43 }
 0x6b7   :  { %v652_v48 = vpop.permute.xlu0 %651 }
 0x6be   :  { %v3281_v45 = vpop.eup %3280 }
 0x6bf   :  { %v475_v46 = vmul.f32 %v3281_v45, %v3279_v40  ;;  %v3283_v47 = vpop.eup %3282 }
 0x6c0   :  { %v650_v50 = vmul.f32 %v3283_v47, %v3275_v25  ;;  %v3285_v51 = vpop.eup %3284 }
 0x6c1   :  { %2970 = vmatmul.mubr.msk.f32.vlgmr.msra.gmra.mrb[6].mxu1 %vm297_vm3, %v475_v46  ;;  %v817_v52 = vmul.f32 %v3285_v51, %v3277_v37  ;;  %v1148_v51 = vld [vmem:[%s3958_s10 + $0x8] sm:$0xff] }
 0x6c2   :  { %2978 = vmatpush3.msra.mxu1 %v652_v48  ;;  %2979 = vmatprep.mubr.msk.f32.mxu1 %vm3357_vm1, %v3356_v36 }
 0x6c3   :  { %2987 = vmatprep.subr.mxu1 %v3356_v36 }
 0x6c5   :  { %2980 = vmatmul.mubr.msk.f32.vlgmr.msra.gmra.mrb[8].mxu1 %vm297_vm3, %v650_v50  ;;  %v1147_v50 = vld [vmem:[%s3958_s10] sm:$0xff] }
 0x6c6   :  { %2988 = vmatpush3.msra.mxu1 %v819_v41  ;;  %2989 = vmatprep.mubr.msk.f32.mxu1 %vm3357_vm1, %v3356_v36  ;;  %v3182_v41 = vpack.c.bf16 %v1148_v51, %v1147_v50 }
 0x6c8   :  { %3183 = vmatprep.subr.bf16.mxu0 %v3182_v41 }
 0x6c9   :  { %2990 = vmatmul.mubr.msk.f32.vlgmr.msra.gmra.mrb[10].mxu1 %vm297_vm3, %v817_v52  ;;  %v1149_v52 = vld [vmem:[%s3958_s10 + $0x10] sm:$0xff] }
 0x6ca   :  { %v3186_v54 = vpack.c.bf16 %v1150_v53, %v1149_v52 }
 0x794   :  { %v548_v60 = vpop.f32.mrb[6].mxu1 }
 0x795   :  { %553 = vrot.lane.b32.xlu1 %v548_v60, %s3977_s6  ;;  %v2971_v61 = vpop.f32.mrb[7].mxu1  ;;  %v1154_v60 = vld [vmem:[%s3958_s10 + $0x38] sm:$0xff] }
 0x796   :  { %v3194_v61 = vpack.c.bf16 %v1154_v60, %v1153_v59  ;;  %v2775_v60 = vld [vmem:[%s3961_s13] ss:$0 sm:$0xff] }
 0x798   :  { %v723_v62 = vpop.f32.mrb[8].mxu1 }
 0x799   :  { %v2981_v63 = vpop.f32.mrb[9].mxu1 }
 0x79c   :  { %v890_v0 = vpop.f32.mrb[10].mxu1 }
 0x79d   :  { %895 = vrot.lane.b32.xlu1 %v890_v0, %s3977_s6  ;;  %v2991_v1 = vpop.f32.mrb[11].mxu1 }
 0x807   :  { %v554_v2 = vpop.permute.xlu1 %553 }
 0x808   :  { %v556_v3 = vsel %vm216_vm2, %v3581_v18, %v554_v2 }
 0x809   :  { %3000 = vmatprep.mubr.msk.f32.mxu0 %vm77_vm0, %v556_v3 }
 0x80f   :  { %v896_v4 = vpop.permute.xlu1 %895 }
 0x810   :  { %v898_v5 = vsel %vm216_vm2, %v723_v62, %v896_v4  ;;  %v2768_v62 = vld [vmem:[%s3957_s9] ss:$0 sm:$0xff] }
 0x811   :  { %3001 = vmatmul.mubr.msk.f32.vlgmr.msra.gmra.mrb[6].mxu0 %vm77_vm0, %v898_v5 }
 0x812   :  { %3185 = vmatpush3.bf16.msra.mxu0 %v3182_v41 }
 0x813   :  { %3187 = vmatprep.subr.bf16.mxu0 %v3186_v54 }
 0x816   :  { %3189 = vmatpush3.bf16.msra.mxu0 %v3186_v54 }
 0x817   :  { %3191 = vmatprep.subr.bf16.mxu0 %v3190_v58 }
 0x81a   :  { %3193 = vmatpush3.bf16.msra.mxu0 %v3190_v58 }
 0x81b   :  { %3195 = vmatprep.subr.bf16.mxu0 %v3194_v61 }
 0x81e   :  { %3197 = vmatpush3.bf16.msra.mxu0 %v3194_v61 }
 0x81f   :  { %3054 = vmatprep.subr.mxu0 %v3356_v36 }
 0x8e4   :  { %v3002_v7 = vpop.f32.mrb[6].mxu0 }
 0x8e5   :  { %v988_v8 = vadd.f32 %v3002_v7, %v2763_v6  ;;  %v982_v9 = vpop.f32.mrb[7].mxu0 }
 0x8e6   :  { %v983_v10 = vadd.f32 %v2763_v6, %v982_v9 }
 0x8e7   :  { %v992_v11 = vadd.f32 %v988_v8, %v3513_v35 }
 0x8e8   :  { %v991_v12 = vadd.f32 %v983_v10, %v3509_v33  ;;  %v1037_v33 = vld [vmem:[%s3956_s8] sm:$0xff] }
 0x8e9   :  { %v998_v13 = vsel %vm77_vm0, %v992_v11, 0.0  ;;  %v3174_v25 = vpack.c.bf16 %v1038_v24, %v1037_v33 }
 0x8ea   :  { %999 = vadd.xlane.f32.xlu1 %v998_v13  ;;  %v995_v14 = vsel %vm77_vm0, %v991_v12, 0.0 }
 0x8eb   :  { %996 = vadd.xlane.f32.xlu0 %v995_v14  ;;  %3175 = vmatprep.subr.bf16.mxu1 %v3174_v25 }
 0x8ec   :  { %3177 = vmatpush3.bf16.msra.mxu1 %v3174_v25 }
 0x8ed   :  { %3179 = vmatprep.subr.bf16.mxu1 %v3178_v28 }
 0x8f0   :  { %3181 = vmatpush3.bf16.msra.mxu1 %v3178_v28 }
 0x977   :  { %v1000_v15 = vpop.xlane.xlu1 %999 }
 0x978   :  { %v1002_v16 = vmul.f32 0.03125, %v1000_v15  ;;  %v997_v17 = vpop.xlane.xlu0 %996 }
 0x979   :  { %v1001_v18 = vmul.f32 0.03125, %v997_v17 }
 0x97a   :  { %v1004_v19 = vsub.f32 %v992_v11, %v1002_v16 }
 0x97b   :  { %v1003_v20 = vsub.f32 %v991_v12, %v1001_v18 }
 0x97c   :  { %v1006_v23 = vmul.f32 %v1004_v19, %v1004_v19 }
 0x97d   :  { %v1005_v21 = vmul.f32 %v1003_v20, %v1003_v20 }
 0x97e   :  { %v1010_v35 = vsel %vm77_vm0, %v1006_v23, 0.0 }
 0x97f   :  { %v1007_v22 = vsel %vm77_vm0, %v1005_v21, 0.0  ;;  %v2771_v21 = vld [vmem:[%s3959_s11] ss:$0 sm:$0xff] }
 0x980   :  { %1008 = vadd.xlane.f32.xlu0 %v1007_v22 }
 0x984   :  { %1011 = vadd.xlane.f32.xlu0 %v1010_v35 }
 0xa0d   :  { %v1009_v29 = vpop.xlane.xlu0 %1008 }
 0xa0e   :  { %v1013_v30 = vmul.f32 0.03125, %v1009_v29 }
 0xa10   :  { %v1015_v31 = vadd.f32 1e-12, %v1013_v30 }
 0xa11   :  { %v1012_v32 = vpop.xlane.xlu0 %1011 }
 0xa12   :  { %3286 = vrsqrt.f32 %v1015_v31  ;;  %v1014_v34 = vmul.f32 0.03125, %v1012_v32 }
 0xa14   :  { %v1016_v37 = vadd.f32 1e-12, %v1014_v34 }
 0xa16   :  { %3288 = vrsqrt.f32 %v1016_v37 }
 0xa1c   :  { %v3287_v38 = vpop.eup %3286 }
 0xa1d   :  { %v1019_v40 = vmul.f32 %v3287_v38, %v1003_v20 }
 0xa1f   :  { %v1027_v43 = vmul.f32 %v2766_v39, %v1019_v40 }
 0xa20   :  { %v3289_v44 = vpop.eup %3288 }
 0xa21   :  { %v1020_v45 = vmul.f32 %v3289_v44, %v1004_v19  ;;  %v1035_v46 = vadd.f32 %v2767_v42, %v1027_v43  ;;  %v2777_v43 = vld [vmem:[%s3993_s1 + $0x28] sm:$0xff] }
 0xa23   :  { %v1028_v47 = vmul.f32 %v2766_v39, %v1020_v45  ;;  %3011 = vmatprep.mubr.msk.f32.mxu1 %vm77_vm0, %v1035_v46  ;;  %v2778_v45 = vld [vmem:[%s3993_s1 + $0x30] sm:$0xff] }
 0xa25   :  { %v1036_v48 = vadd.f32 %v2767_v42, %v1028_v47  ;;  %v2776_v42 = vld [vmem:[%s3993_s1 + $0x20] sm:$0xff] }
 0xa26   :  { %v3198_v44 = vpack.c.bf16 %v2777_v43, %v2776_v42 }
 0xa27   :  { %3012 = vmatmul.mubr.msk.f32.vlgmr.msra.gmra.mrb[12].mxu1 %vm77_vm0, %v1036_v48 }
 0xa28   :  { %3199 = vmatprep.subr.bf16.mxu1 %v3198_v44 }
 0xa29   :  { %3201 = vmatpush3.bf16.msra.mxu1 %v3198_v44 }
 0xafa   :  { %v3013_v63 = vpop.f32.mrb[12].mxu1 }
 0xafb   :  { %v1126_v0 = vadd.f32 %v3013_v63, %v2768_v62  ;;  %v1120_v1 = vpop.f32.mrb[13].mxu1 }
 0xafc   :  { %v1121_v2 = vadd.f32 %v2768_v62, %v1120_v1  ;;  %v2781_v1 = vld [vmem:[%s3994_s30 + $0x1] ss:$0 sm:$0xff]  ;;  %s4000_s30 = smov 48  }
 0xafd   :  { %v1132_v3 = vmul.f32 0.044715, %v1126_v0  ;;  %v1130_v18 = vmul.f32 0.5, %v1126_v0 }
 0xafe   :  { %v1131_v4 = vmul.f32 0.044715, %v1121_v2  ;;  %v1129_v16 = vmul.f32 0.5, %v1121_v2 }
 0xaff   :  { %v1134_v5 = vmul.f32 %v1132_v3, %v1126_v0 }
 0xb00   :  { %v1133_v6 = vmul.f32 %v1131_v4, %v1121_v2 }
 0xb01   :  { %v1136_v7 = vmul.f32 %v1134_v5, %v1126_v0 }
 0xb02   :  { %v1135_v8 = vmul.f32 %v1133_v6, %v1121_v2 }
 0xb03   :  { %v1138_v9 = vadd.f32 %v1136_v7, %v1126_v0 }
 0xb04   :  { %v1137_v10 = vadd.f32 %v1135_v8, %v1121_v2 }
 0xb05   :  { %v1140_v11 = vmul.f32 0.7978846, %v1138_v9 }
 0xb06   :  { %v1139_v12 = vmul.f32 0.7978846, %v1137_v10 }
 0xb07   :  { %3290 = vtanh.f32 %v1140_v11 }
 0xb08   :  { %3292 = vtanh.f32 %v1139_v12 }
 0xb11   :  { %v3291_v13 = vpop.eup %3290 }
 0xb12   :  { %v3293_v14 = vpop.eup %3292  ;;  %v1144_v15 = vadd.f32 1.0, %v3291_v13 }
 0xb13   :  { %v1143_v17 = vadd.f32 1.0, %v3293_v14 }
 0xb14   :  { %v1146_v20 = vmul.f32 %v1144_v15, %v1130_v18 }
 0xb15   :  { %v1145_v19 = vmul.f32 %v1143_v17, %v1129_v16 }
 0xb17   :  { %3030 = vmatprep.mubr.msk.f32.mxu0 %vm1162_vm4, %v1145_v19 }
 0xb18   :  { %3031 = vmatmul.mubr.msk.f32.vlgmr.msra.gmra.mrb[8].mxu0 %vm1162_vm4, %v1146_v20 }
 0xb19   :  { %3056 = vmatprep.mubr.msk.f32.mxu0 %vm3357_vm1, %v3356_v36 }
 0xbeb   :  { %v3032_v22 = vpop.f32.mrb[8].mxu0 }
 0xbec   :  { %v1241_v23 = vadd.f32 %v3032_v22, %v2771_v21  ;;  %v1235_v35 = vpop.f32.mrb[9].mxu0 }
 0xbed   :  { %v1236_v33 = vadd.f32 %v2771_v21, %v1235_v35 }
 0xbee   :  { %v1245_v24 = vadd.f32 %v1241_v23, %v1036_v48 }
 0xbef   :  { %v1244_v25 = vadd.f32 %v1236_v33, %v1035_v46  ;;  %v2779_v46 = vld [vmem:[%s3993_s1 + $0x38] sm:$0xff] }
 0xbf0   :  { %v1251_v26 = vsel %vm77_vm0, %v1245_v24, 0.0  ;;  %v3202_v47 = vpack.c.bf16 %v2779_v46, %v2778_v45 }
 0xbf1   :  { %1252 = vadd.xlane.f32.xlu1 %v1251_v26  ;;  %v1248_v27 = vsel %vm77_vm0, %v1244_v25, 0.0 }
 0xbf2   :  { %1249 = vadd.xlane.f32.xlu0 %v1248_v27  ;;  %3203 = vmatprep.subr.bf16.mxu1 %v3202_v47 }
 0xbf3   :  { %3205 = vmatpush3.bf16.msra.mxu1 %v3202_v47 }
 0xbf4   :  { %3044 = vmatprep.subr.mxu1 %v3356_v36 }
 0xc7e   :  { %v1253_v28 = vpop.xlane.xlu1 %1252 }
 0xc7f   :  { %v1255_v29 = vmul.f32 0.03125, %v1253_v28  ;;  %v1250_v30 = vpop.xlane.xlu0 %1249 }
 0xc80   :  { %v1254_v31 = vmul.f32 0.03125, %v1250_v30 }
 0xc81   :  { %v1257_v32 = vsub.f32 %v1245_v24, %v1255_v29 }
 0xc82   :  { %v1256_v34 = vsub.f32 %v1244_v25, %v1254_v31 }
 0xc83   :  { %v1259_v37 = vmul.f32 %v1257_v32, %v1257_v32 }
 0xc84   :  { %v1258_v38 = vmul.f32 %v1256_v34, %v1256_v34 }
 0xc85   :  { %v1263_v39 = vsel %vm77_vm0, %v1259_v37, 0.0 }
 0xc86   :  { %1264 = vadd.xlane.f32.xlu1 %v1263_v39  ;;  %v1260_v40 = vsel %vm77_vm0, %v1258_v38, 0.0 }
 0xc87   :  { %1261 = vadd.xlane.f32.xlu0 %v1260_v40 }
 0xd13   :  { %v1265_v48 = vpop.xlane.xlu1 %1264 }
 0xd14   :  { %v1267_v50 = vmul.f32 0.03125, %v1265_v48  ;;  %v1262_v51 = vpop.xlane.xlu0 %1261 }
 0xd15   :  { %v1266_v41 = vmul.f32 0.03125, %v1262_v51 }
 0xd16   :  { %v1269_v52 = vadd.f32 1e-12, %v1267_v50 }
 0xd17   :  { %v1268_v53 = vadd.f32 1e-12, %v1266_v41 }
 0xd18   :  { %3294 = vrsqrt.f32 %v1269_v52 }
 0xd19   :  { %3296 = vrsqrt.f32 %v1268_v53 }
 0xd22   :  { %v3295_v54 = vpop.eup %3294 }
 0xd23   :  { %v3297_v57 = vpop.eup %3296  ;;  %v1273_v58 = vmul.f32 %v3295_v54, %v1257_v32 }
 0xd24   :  { %v1272_v59 = vmul.f32 %v3297_v57, %v1256_v34 }
 0xd25   :  { %v1281_v61 = vmul.f32 %v2774_v55, %v1273_v58 }
 0xd26   :  { %v1280_v62 = vmul.f32 %v2774_v55, %v1272_v59 }
 0xd27   :  { %v3711_v0 = vadd.f32 %v2775_v60, %v1281_v61 }
 0xd28   :  { %v3709_v63 = vadd.f32 %v2775_v60, %v1280_v62 }
 0xd2a   :  { %3041 = vmatprep.mubr.msk.f32.mxu1 %vm77_vm0, %v3709_v63 }
 0xd2b   :  { %3042 = vmatmul.mubr.msk.f32.vlgmr.msra.gmra.mrb[14].mxu1 %vm77_vm0, %v3711_v0 }
 0xd2c   :  { %3046 = vmatprep.mubr.msk.f32.mxu1 %vm3357_vm1, %v3356_v36 }
 0xdfe   :  { %v3043_v2 = vpop.f32.mrb[14].mxu1 }
 0xdff   :  { %v1375_v3 = vpop.f32.mrb[15].mxu1  ;;  %v3728_v5 = vadd.f32 %v3043_v2, %v2781_v1 }
 0xe00   :  { %v3722_v4 = vadd.f32 %v2781_v1, %v1375_v3 }
 0xe02   :  { %1552 = vrot.lane.b32.xlu1 %v3722_v4, %s3359_s0  ;;  %1385 = vrot.lane.b32.xlu0 %v3722_v4, %s3358_s4 }
 0xe06   :  { %1550 = vrot.lane.b32.xlu1 %v3722_v4, %s3999_s29  ;;  %1890 = vrot.lane.b32.xlu0 %v3728_v5, %s3359_s0 }
 0xe0a   :  { %1723 = vrot.lane.b32.xlu1 %v3728_v5, %s3358_s4  ;;  %s4001_s4 = smov 64  }
 0xe0e   :  { %1888 = vrot.lane.b32.xlu1 %v3728_v5, %s3999_s29 }
 0xe74   :  { %v1553_v6 = vpop.permute.xlu1 %1552  ;;  %v1386_v7 = vpop.permute.xlu0 %1385 }
 0xe75   :  { %3045 = vmatpush3.xpose.msk.msra.mxu1 %vm216_vm2, %v1386_v7  ;;  %3055 = vmatpush3.xpose.msk.msra.mxu0 %vm216_vm2, %v1553_v6  ;;  %v2796_v7 = vld [vmem:[%s3996_s3 + $0x20] sm:$0xff] }
 0xe76   :  { %3064 = vmatprep.subr.mxu0 %v3356_v36  ;;  %3049 = vmatprep.subr.mxu1 %v3356_v36 }
 0xe78   :  { %v1551_v8 = vpop.permute.xlu1 %1550  ;;  %3047 = vmatmul.mubr.msk.f32.vlgmr.msra.gmra.mrb[16].mxu1 %vm216_vm2, %v3722_v4  ;;  %v1891_v10 = vpop.permute.xlu0 %1890 }
 0xe79   :  { %3057 = vmatmul.mubr.msk.f32.vlgmr.msra.gmra.mrb[10].mxu0 %vm216_vm2, %v1551_v8  ;;  %3051 = vmatprep.mubr.msk.f32.mxu1 %vm3357_vm1, %v3356_v36  ;;  %v2797_v8 = vld [vmem:[%s3996_s3 + $0x28] sm:$0xff] }
 0xe7a   :  { %3066 = vmatprep.mubr.msk.f32.mxu0 %vm3357_vm1, %v3356_v36 }
 0xe7c   :  { %v1724_v9 = vpop.permute.xlu1 %1723 }
 0xe7d   :  { %3065 = vmatpush3.xpose.msk.msra.mxu0 %vm216_vm2, %v1724_v9  ;;  %v2798_v9 = vld [vmem:[%s3996_s3 + $0x30] sm:$0xff] }
 0xe7e   :  { %3074 = vmatprep.subr.mxu0 %v3356_v36 }
 0xe80   :  { %3067 = vmatmul.mubr.msk.f32.vlgmr.msra.gmra.mrb[12].mxu0 %vm216_vm2, %v3728_v5  ;;  %v1889_v11 = vpop.permute.xlu1 %1888 }
 0xe81   :  { %3075 = vmatpush3.xpose.msk.msra.mxu0 %vm216_vm2, %v1891_v10  ;;  %3076 = vmatprep.mubr.msk.f32.mxu0 %vm3357_vm1, %v3356_v36  ;;  %v3206_v10 = vpack.c.bf16 %v2797_v8, %v2796_v7  ;;  %v2819_v7 = vld [vmem:[%s3958_s10 + $0x58] sm:$0xff] }
 0xe83   :  { %3207 = vmatprep.subr.bf16.mxu0 %v3206_v10 }
 0xe84   :  { %3077 = vmatmul.mubr.msk.f32.vlgmr.msra.gmra.mrb[14].mxu0 %vm216_vm2, %v1889_v11  ;;  %v2799_v11 = vld [vmem:[%s3996_s3 + $0x38] sm:$0xff] }
 0xe85   :  { %3209 = vmatpush3.bf16.msra.mxu0 %v3206_v10  ;;  %v2821_v10 = vld [vmem:[%s3958_s10 + $0x68] sm:$0xff] }
 0xf4b   :  { %v1457_v12 = vpop.f32.mrb[16].mxu1 }
 0xf4c   :  { %v1461_v13 = vmul.f32 0.25, %v1457_v12  ;;  %v3048_v14 = vpop.f32.mrb[17].mxu1  ;;  %v1624_v15 = vpop.f32.mrb[10].mxu0  ;;  %v3210_v12 = vpack.c.bf16 %v2799_v11, %v2798_v9  ;;  %v2820_v9 = vld [vmem:[%s3958_s10 + $0x60] sm:$0xff] }
 0xf4d   :  { %v1628_v16 = vmul.f32 0.25, %v1624_v15  ;;  %v3058_v17 = vpop.f32.mrb[11].mxu0  ;;  %v3230_v11 = vpack.c.bf16 %v2821_v10, %v2820_v9 }
 0xf4e   :  { %v1462_v18 = vadd.f32 %v1461_v13, %v3553_v49  ;;  %3211 = vmatprep.subr.bf16.mxu0 %v3210_v12 }
 0xf4f   :  { %v1629_v19 = vadd.f32 %v1628_v16, %v3553_v49  ;;  %3213 = vmatpush3.bf16.msra.mxu0 %v3210_v12  ;;  %v2822_v12 = vld [vmem:[%s3958_s10 + $0x70] sm:$0xff] }
 0xf50   :  { %v1463_v20 = vsel %vm297_vm3, %v1462_v18, -inf }
 0xf51   :  { %1464 = vmax.xlane.f32.xlu0 %v1463_v20  ;;  %v1630_v21 = vsel %vm297_vm3, %v1629_v19, -inf }
 0xf52   :  { %1631 = vmax.xlane.f32.xlu1 %v1630_v21 }
 0xf53   :  { %v1795_v22 = vpop.f32.mrb[12].mxu0 }
 0xf54   :  { %v1799_v23 = vmul.f32 0.25, %v1795_v22  ;;  %v3068_v35 = vpop.f32.mrb[13].mxu0 }
 0xf56   :  { %v1800_v33 = vadd.f32 %v1799_v23, %v3557_v56 }
 0xf57   :  { %v1962_v24 = vpop.f32.mrb[14].mxu0 }
 0xf58   :  { %v1966_v25 = vmul.f32 0.25, %v1962_v24  ;;  %v3078_v26 = vpop.f32.mrb[15].mxu0  ;;  %v1801_v27 = vsel %vm297_vm3, %v1800_v33, -inf }
 0xf59   :  { %1802 = vmax.xlane.f32.xlu0 %v1801_v27 }
 0xf5a   :  { %v1967_v28 = vadd.f32 %v1966_v25, %v3557_v56 }
 0xf5c   :  { %v1968_v49 = vsel %vm297_vm3, %v1967_v28, -inf }
 0xf5d   :  { %1969 = vmax.xlane.f32.xlu0 %v1968_v49 }
 0xfde   :  { %v1465_v29 = vpop.xlane.xlu0 %1464 }
 0xfdf   :  { %v1466_v30 = vsub.f32 %v1462_v18, %v1465_v29  ;;  %v1632_v31 = vpop.xlane.xlu1 %1631 }
 0xfe0   :  { %v1633_v32 = vsub.f32 %v1629_v19, %v1632_v31 }
 0xfe1   :  { %v1467_v34 = vmul.f32 1.442695, %v1466_v30 }
 0xfe2   :  { %v1634_v37 = vmul.f32 1.442695, %v1633_v32 }
 0xfe3   :  { %3298 = vpow2.f32 %v1467_v34 }
 0xfe4   :  { %3300 = vpow2.f32 %v1634_v37 }
 0xfe6   :  { %v1803_v38 = vpop.xlane.xlu0 %1802 }
 0xfe7   :  { %v1804_v39 = vsub.f32 %v1800_v33, %v1803_v38  ;;  %v2801_v33 = vld [vmem:[%s3997_s28 + $0x1] ss:$0 sm:$0xff] }
 0xfe9   :  { %v1805_v40 = vmul.f32 1.442695, %v1804_v39 }
 0xfea   :  { %v1970_v47 = vpop.xlane.xlu0 %1969 }
 0xfeb   :  { %3302 = vpow2.f32 %v1805_v40  ;;  %v1971_v48 = vsub.f32 %v1967_v28, %v1970_v47 }
 0xfed   :  { %v3299_v42 = vpop.eup %3298  ;;  %v1972_v50 = vmul.f32 1.442695, %v1971_v48 }
 0xfee   :  { %v3301_v43 = vpop.eup %3300  ;;  %v1469_v44 = vsel %vm297_vm3, %v3299_v42, 0.0 }
 0xfef   :  { %1470 = vadd.xlane.f32.xlu0 %v1469_v44  ;;  %v1636_v56 = vsel %vm297_vm3, %v3301_v43, 0.0  ;;  %3304 = vpow2.f32 %v1972_v50  ;;  %v2809_v44 = vld [vmem:[%s3956_s8 + $0x28] sm:$0xff] }
 0xff0   :  { %1637 = vadd.xlane.f32.xlu1 %v1636_v56 }
 0xff5   :  { %v3303_v45 = vpop.eup %3302 }
 0xff6   :  { %v1807_v46 = vsel %vm297_vm3, %v3303_v45, 0.0 }
 0xff7   :  { %1808 = vadd.xlane.f32.xlu0 %v1807_v46  ;;  %v2811_v46 = vld [vmem:[%s3956_s8 + $0x38] sm:$0xff] }
 0xff9   :  { %v3305_v51 = vpop.eup %3304 }
 0xffa   :  { %v1974_v41 = vsel %vm297_vm3, %v3305_v51, 0.0 }
0x1001   :  { %1641 = vrot.lane.b32.xlu1 %v3722_v4, %s4000_s30 }
0x1005   :  { %1812 = vrot.lane.b32.xlu1 %v3728_v5, %s4001_s4 }
0x100d   :  { %1474 = vrot.lane.b32.xlu0 %v3722_v4, %s4001_s4 }
0x1029   :  { %1975 = vadd.xlane.f32.xlu1 %v1974_v41 }
0x103a   :  { %1979 = vrot.lane.b32.xlu1 %v3728_v5, %s4000_s30 }
0x107c   :  { %v1471_v52 = vpop.xlane.xlu0 %1470 }
0x107d   :  { %3306 = vrcp.f32 %v1471_v52  ;;  %v1638_v53 = vpop.xlane.xlu1 %1637 }
0x107e   :  { %3308 = vrcp.f32 %v1638_v53 }
0x1081   :  { %v1642_v58 = vpop.permute.xlu1 %1641 }
0x1084   :  { %v1809_v54 = vpop.xlane.xlu0 %1808 }
0x1085   :  { %3310 = vrcp.f32 %v1809_v54  ;;  %v1813_v62 = vpop.permute.xlu1 %1812 }
0x1087   :  { %v3307_v55 = vpop.eup %3306 }
0x1088   :  { %v1473_v57 = vmul.f32 %v3307_v55, %v3299_v42  ;;  %v1475_v59 = vpop.permute.xlu0 %1474  ;;  %v3309_v60 = vpop.eup %3308  ;;  %v2806_v55 = vld [vmem:[%s3998_s15 + $0x1] ss:$0 sm:$0xff] }
0x1089   :  { %3050 = vmatpush3.msra.mxu1 %v1475_v59  ;;  %v1640_v61 = vmul.f32 %v3309_v60, %v3301_v43 }
0x108a   :  { %3052 = vmatmul.mubr.msk.f32.vlgmr.msra.gmra.mrb[18].mxu1 %vm297_vm3, %v1473_v57  ;;  %3059 = vmatprep.subr.mxu1 %v3356_v36 }
0x108b   :  { %3060 = vmatpush3.msra.mxu1 %v1642_v58  ;;  %3061 = vmatprep.mubr.msk.f32.mxu1 %vm3357_vm1, %v3356_v36  ;;  %v2807_v58 = vld [vmem:[%s3955_s7 + $0x1] ss:$0 sm:$0xff] }
0x108c   :  { %3069 = vmatprep.subr.mxu1 %v3356_v36 }
0x108e   :  { %3062 = vmatmul.mubr.msk.f32.vlgmr.msra.gmra.mrb[20].mxu1 %vm297_vm3, %v1640_v61 }
0x108f   :  { %v3311_v1 = vpop.eup %3310  ;;  %3070 = vmatpush3.msra.mxu1 %v1813_v62  ;;  %3071 = vmatprep.mubr.msk.f32.mxu1 %vm3357_vm1, %v3356_v36 }
0x1090   :  { %v1811_v2 = vmul.f32 %v3311_v1, %v3303_v45  ;;  %3079 = vmatprep.subr.mxu1 %v3356_v36  ;;  %v2810_v45 = vld [vmem:[%s3956_s8 + $0x30] sm:$0xff] }
0x1091   :  { %v3218_v47 = vpack.c.bf16 %v2811_v46, %v2810_v45 }
0x1092   :  { %3072 = vmatmul.mubr.msk.f32.vlgmr.msra.gmra.mrb[22].mxu1 %vm297_vm3, %v1811_v2 }
0x1093   :  { %3081 = vmatprep.mubr.msk.f32.mxu1 %vm3357_vm1, %v3356_v36 }
0x10b6   :  { %v1976_v3 = vpop.xlane.xlu1 %1975 }
0x10b7   :  { %3312 = vrcp.f32 %v1976_v3  ;;  %v2816_v3 = vld [vmem:[%s3958_s10 + $0x40] sm:$0xff] }
0x10ba   :  { %v1980_v4 = vpop.permute.xlu1 %1979 }
0x10bb   :  { %3080 = vmatpush3.msra.mxu1 %v1980_v4  ;;  %v2817_v4 = vld [vmem:[%s3958_s10 + $0x48] sm:$0xff] }
0x10c1   :  { %v3313_v5 = vpop.eup %3312 }
0x10c2   :  { %v1978_v6 = vmul.f32 %v3313_v5, %v3305_v51  ;;  %v3222_v5 = vpack.c.bf16 %v2817_v4, %v2816_v3 }
0x10c4   :  { %3082 = vmatmul.mubr.msk.f32.vlgmr.msra.gmra.mrb[24].mxu1 %vm297_vm3, %v1978_v6  ;;  %v2818_v6 = vld [vmem:[%s3958_s10 + $0x50] sm:$0xff]  ;;  %3223 = vmatprep.subr.bf16.mxu0 %v3222_v5 }
0x10c5   :  { %v3226_v8 = vpack.c.bf16 %v2819_v7, %v2818_v6 }
0x115d   :  { %v1546_v13 = vpop.f32.mrb[18].mxu1 }
0x115e   :  { %v3053_v14 = vpop.f32.mrb[19].mxu1 }
0x1161   :  { %v1713_v15 = vpop.f32.mrb[20].mxu1 }
0x1162   :  { %1718 = vrot.lane.b32.xlu0 %v1713_v15, %s4002_s24  ;;  %v3063_v16 = vpop.f32.mrb[21].mxu1  ;;  %v2813_v15 = vld [vmem:[%s3957_s9 + $0x1] ss:$0 sm:$0xff] }
0x1165   :  { %v1884_v17 = vpop.f32.mrb[22].mxu1 }
0x1166   :  { %v3073_v18 = vpop.f32.mrb[23].mxu1 }
0x1197   :  { %v2051_v19 = vpop.f32.mrb[24].mxu1 }
0x1198   :  { %2056 = vrot.lane.b32.xlu1 %v2051_v19, %s4002_s24  ;;  %v3083_v20 = vpop.f32.mrb[25].mxu1 }
0x11d4   :  { %v1719_v21 = vpop.permute.xlu0 %1718 }
0x11d5   :  { %v1721_v22 = vsel %vm216_vm2, %v1546_v13, %v1719_v21  ;;  %v2823_v13 = vld [vmem:[%s3958_s10 + $0x78] sm:$0xff] }
0x11d6   :  { %3092 = vmatprep.mubr.msk.f32.mxu0 %vm77_vm0, %v1721_v22  ;;  %v3234_v14 = vpack.c.bf16 %v2823_v13, %v2822_v12  ;;  %v2831_v12 = vld [vmem:[%s3961_s13 + $0x1] ss:$0 sm:$0xff] }
0x120a   :  { %v2057_v23 = vpop.permute.xlu1 %2056 }
0x120b   :  { %v2059_v35 = vsel %vm216_vm2, %v1884_v17, %v2057_v23 }
0x120c   :  { %3093 = vmatmul.mubr.msk.f32.vlgmr.msra.gmra.mrb[16].mxu0 %vm77_vm0, %v2059_v35 }
0x120d   :  { %3225 = vmatpush3.bf16.msra.mxu0 %v3222_v5 }
0x120e   :  { %3227 = vmatprep.subr.bf16.mxu0 %v3226_v8 }
0x1211   :  { %3229 = vmatpush3.bf16.msra.mxu0 %v3226_v8  ;;  %v2830_v8 = vld [vmem:[%s3960_s12 + $0x1] ss:$0 sm:$0xff] }
0x1212   :  { %3231 = vmatprep.subr.bf16.mxu0 %v3230_v11 }
0x1215   :  { %3233 = vmatpush3.bf16.msra.mxu0 %v3230_v11 }
0x1216   :  { %3235 = vmatprep.subr.bf16.mxu0 %v3234_v14 }
0x1219   :  { %3237 = vmatpush3.bf16.msra.mxu0 %v3234_v14 }
0x12df   :  { %v3094_v24 = vpop.f32.mrb[16].mxu0 }
0x12e0   :  { %v2151_v25 = vadd.f32 %v3094_v24, %v2801_v33  ;;  %v2145_v26 = vpop.f32.mrb[17].mxu0 }
0x12e1   :  { %v2146_v27 = vadd.f32 %v2801_v33, %v2145_v26 }
0x12e2   :  { %v2155_v28 = vadd.f32 %v2151_v25, %v3711_v0 }
0x12e3   :  { %v2154_v49 = vadd.f32 %v2146_v27, %v3709_v63  ;;  %v2808_v63 = vld [vmem:[%s3956_s8 + $0x20] sm:$0xff] }
0x12e4   :  { %v2163_v29 = vsel %vm77_vm0, %v2155_v28, 0.0  ;;  %v3214_v56 = vpack.c.bf16 %v2809_v44, %v2808_v63 }
0x12e5   :  { %2164 = vadd.xlane.f32.xlu1 %v2163_v29  ;;  %v2160_v30 = vsel %vm77_vm0, %v2154_v49, 0.0 }
0x12e6   :  { %2161 = vadd.xlane.f32.xlu0 %v2160_v30  ;;  %3215 = vmatprep.subr.bf16.mxu1 %v3214_v56 }
0x12e7   :  { %3217 = vmatpush3.bf16.msra.mxu1 %v3214_v56 }
0x12e8   :  { %3219 = vmatprep.subr.bf16.mxu1 %v3218_v47 }
0x12eb   :  { %3221 = vmatpush3.bf16.msra.mxu1 %v3218_v47 }
0x1372   :  { %v2165_v31 = vpop.xlane.xlu1 %2164 }
0x1373   :  { %v2167_v32 = vmul.f32 0.03125, %v2165_v31  ;;  %v2162_v34 = vpop.xlane.xlu0 %2161 }
0x1374   :  { %v2166_v37 = vmul.f32 0.03125, %v2162_v34 }
0x1375   :  { %v2169_v38 = vsub.f32 %v2155_v28, %v2167_v32 }
0x1376   :  { %v2168_v39 = vsub.f32 %v2154_v49, %v2166_v37 }
0x1377   :  { %v2171_v43 = vmul.f32 %v2169_v38, %v2169_v38 }
0x1378   :  { %v2170_v40 = vmul.f32 %v2168_v39, %v2168_v39 }
0x1379   :  { %v2175_v0 = vsel %vm77_vm0, %v2171_v43, 0.0 }
0x137a   :  { %v2172_v42 = vsel %vm77_vm0, %v2170_v40, 0.0 }
0x137b   :  { %2173 = vadd.xlane.f32.xlu0 %v2172_v42 }
0x137f   :  { %2176 = vadd.xlane.f32.xlu0 %v2175_v0 }
0x1408   :  { %v2174_v48 = vpop.xlane.xlu0 %2173 }
0x1409   :  { %v2178_v50 = vmul.f32 0.03125, %v2174_v48 }
0x140b   :  { %v2180_v51 = vadd.f32 1e-12, %v2178_v50 }
0x140c   :  { %v2177_v41 = vpop.xlane.xlu0 %2176 }
0x140d   :  { %3314 = vrsqrt.f32 %v2180_v51  ;;  %v2179_v52 = vmul.f32 0.03125, %v2177_v41 }
0x140f   :  { %v2181_v53 = vadd.f32 1e-12, %v2179_v52 }
0x1411   :  { %3316 = vrsqrt.f32 %v2181_v53 }
0x1417   :  { %v3315_v54 = vpop.eup %3314 }
0x1418   :  { %v2184_v57 = vmul.f32 %v3315_v54, %v2168_v39 }
0x141a   :  { %v2192_v59 = vmul.f32 %v2806_v55, %v2184_v57  ;;  %v2466_v57 = vld [vmem:[%s3964_s16 + $0x8] sm:$0xff] }
0x141b   :  { %v3317_v60 = vpop.eup %3316 }
0x141c   :  { %v2185_v61 = vmul.f32 %v3317_v60, %v2169_v38  ;;  %v2200_v62 = vadd.f32 %v2807_v58, %v2192_v59  ;;  %v2825_v38 = vld [vmem:[%s3959_s11 + $0x1] ss:$0 sm:$0xff]  ;;  %v2467_v59 = vld [vmem:[%s3964_s16 + $0x10] sm:$0xff]  ;;  %v2468_v60 = vld [vmem:[%s3964_s16 + $0x18] sm:$0xff] }
0x141e   :  { %v2193_v1 = vmul.f32 %v2806_v55, %v2185_v61  ;;  %3103 = vmatprep.mubr.msk.f32.mxu1 %vm77_vm0, %v2200_v62  ;;  %v2465_v55 = vld [vmem:[%s3964_s16] sm:$0xff]  ;;  %v3364_v61 = vmov 0.0|0.0  }
0x141f   :  { %3238 = vmatprep.subr.bf16.mxu1 %v3364_v61  ;;  %3250 = vmatprep.subr.bf16.mxu0 %v3364_v61 }
0x1420   :  { %v2201_v2 = vadd.f32 %v2807_v58, %v2193_v1  ;;  %v3239_v58 = vpack.c.bf16 %v2466_v57, %v2465_v55 }
0x1422   :  { %3104 = vmatmul.mubr.msk.f32.vlgmr.msra.gmra.mrb[26].mxu1 %vm77_vm0, %v2201_v2 }
0x1423   :  { %3133 = vmatprep.mubr.msk.f32.mxu1 %vm3357_vm1, %v3356_v36  ;;  %3240 = vmatpush3.bf16.msra.mxu1 %v3239_v58 }
0x1424   :  { %3241 = vmatprep.subr.bf16.mxu1 %v3364_v61 }
0x14f5   :  { %v3105_v16 = vpop.f32.mrb[26].mxu1 }
0x14f6   :  { %v2293_v17 = vadd.f32 %v3105_v16, %v2813_v15  ;;  %v2287_v18 = vpop.f32.mrb[27].mxu1 }
0x14f7   :  { %v2288_v19 = vadd.f32 %v2813_v15, %v2287_v18 }
0x14f8   :  { %v2299_v20 = vmul.f32 0.044715, %v2293_v17  ;;  %v2297_v32 = vmul.f32 0.5, %v2293_v17 }
0x14f9   :  { %v2298_v21 = vmul.f32 0.044715, %v2288_v19  ;;  %v2296_v30 = vmul.f32 0.5, %v2288_v19 }
0x14fa   :  { %v2301_v22 = vmul.f32 %v2299_v20, %v2293_v17  ;;  %v2551_v20 = vld [vmem:[%s3966_s18 + $0x8] sm:$0xff] }
0x14fb   :  { %v2300_v23 = vmul.f32 %v2298_v21, %v2288_v19  ;;  %v2552_v21 = vld [vmem:[%s3966_s18 + $0x10] sm:$0xff] }
0x14fc   :  { %v2303_v35 = vmul.f32 %v2301_v22, %v2293_v17 }
0x14fd   :  { %v2302_v33 = vmul.f32 %v2300_v23, %v2288_v19  ;;  %v2553_v23 = vld [vmem:[%s3966_s18 + $0x18] sm:$0xff] }
0x14fe   :  { %v2305_v24 = vadd.f32 %v2303_v35, %v2293_v17  ;;  %v3248_v35 = vpack.c.bf16 %v2553_v23, %v2552_v21 }
0x14ff   :  { %v2304_v25 = vadd.f32 %v2302_v33, %v2288_v19  ;;  %v2550_v19 = vld [vmem:[%s3966_s18] sm:$0xff]  ;;  %v2636_v33 = vld [vmem:[%s3968_s20 + $0x8] sm:$0xff] }
0x1500   :  { %v2307_v26 = vmul.f32 0.7978846, %v2305_v24  ;;  %v3245_v22 = vpack.c.bf16 %v2551_v20, %v2550_v19 }
0x1501   :  { %v2306_v27 = vmul.f32 0.7978846, %v2304_v25  ;;  %v2832_v25 = vld [vmem:[%s3965_s17] ss:$0 sm:$0xff] }
0x1502   :  { %3318 = vtanh.f32 %v2307_v26 }
0x1503   :  { %3320 = vtanh.f32 %v2306_v27 }
0x150c   :  { %v3319_v28 = vpop.eup %3318 }
0x150d   :  { %v3321_v49 = vpop.eup %3320  ;;  %v2311_v29 = vadd.f32 1.0, %v3319_v28 }
0x150e   :  { %v2310_v31 = vadd.f32 1.0, %v3321_v49 }
0x150f   :  { %v2313_v37 = vmul.f32 %v2311_v29, %v2297_v32  ;;  %v2637_v29 = vld [vmem:[%s3968_s20 + $0x10] sm:$0xff]  ;;  %v2834_v32 = vld [vmem:[%s3967_s19] ss:$0 sm:$0xff]  ;;  %s3365_s19 = smov [#allocation2]  }
0x1510   :  { %v2312_v34 = vmul.f32 %v2310_v31, %v2296_v30  ;;  %v2638_v30 = vld [vmem:[%s3968_s20 + $0x18] sm:$0xff] }
0x1511   :  { %v3254_v31 = vpack.c.bf16 %v2638_v30, %v2637_v29 }
0x1512   :  { %3122 = vmatprep.mubr.msk.f32.mxu0 %vm1162_vm4, %v2312_v34 }
0x1513   :  { %3123 = vmatmul.mubr.msk.f32.vlgmr.msra.gmra.mrb[18].mxu0 %vm1162_vm4, %v2313_v37 }
0x1514   :  { %3155 = vmatprep.mubr.msk.f32.mxu0 %vm3357_vm1, %v3356_v36 }
0x15e6   :  { %v3124_v39 = vpop.f32.mrb[18].mxu0 }
0x15e7   :  { %v2409_v40 = vadd.f32 %v3124_v39, %v2825_v38  ;;  %v2403_v42 = vpop.f32.mrb[19].mxu0 }
0x15e8   :  { %v2404_v43 = vadd.f32 %v2825_v38, %v2403_v42 }
0x15e9   :  { %v2413_v0 = vadd.f32 %v2409_v40, %v2201_v2  ;;  %v2836_v40 = vld [vmem:[%s3969_s21] ss:$0 sm:$0xff] }
0x15ea   :  { %v2412_v63 = vadd.f32 %v2404_v43, %v2200_v62  ;;  %v3242_v62 = vpack.c.bf16 %v2468_v60, %v2467_v59 }
0x15eb   :  { %v2421_v44 = vsel %vm77_vm0, %v2413_v0, 0.0 }
0x15ec   :  { %2422 = vadd.xlane.f32.xlu0 %v2421_v44  ;;  %v2418_v56 = vsel %vm77_vm0, %v2412_v63, 0.0  ;;  %3243 = vmatpush3.bf16.msra.mxu1 %v3242_v62 }
0x15ed   :  { %2419 = vadd.xlane.f32.xlu1 %v2418_v56  ;;  %3244 = vmatprep.subr.bf16.mxu1 %v3364_v61 }
0x1679   :  { %v2423_v45 = vpop.xlane.xlu0 %2422 }
0x167a   :  { %v2425_v46 = vmul.f32 0.03125, %v2423_v45  ;;  %v2420_v47 = vpop.xlane.xlu1 %2419 }
0x167b   :  { %v2424_v48 = vmul.f32 0.03125, %v2420_v47 }
0x167c   :  { %v2427_v50 = vsub.f32 %v2413_v0, %v2425_v46 }
0x167d   :  { %v2426_v51 = vsub.f32 %v2412_v63, %v2424_v48 }
0x167e   :  { %v2429_v41 = vmul.f32 %v2427_v50, %v2427_v50 }
0x167f   :  { %v2428_v52 = vmul.f32 %v2426_v51, %v2426_v51 }
0x1680   :  { %v2433_v53 = vsel %vm77_vm0, %v2429_v41, 0.0 }
0x1681   :  { %2434 = vadd.xlane.f32.xlu0 %v2433_v53  ;;  %v2430_v54 = vsel %vm77_vm0, %v2428_v52, 0.0 }
0x1682   :  { %2431 = vadd.xlane.f32.xlu1 %v2430_v54 }
0x170e   :  { %v2435_v1 = vpop.xlane.xlu0 %2434 }
0x170f   :  { %v2437_v2 = vmul.f32 0.03125, %v2435_v1  ;;  %v2432_v3 = vpop.xlane.xlu1 %2431 }
0x1710   :  { %v2436_v4 = vmul.f32 0.03125, %v2432_v3 }
0x1711   :  { %v2439_v5 = vadd.f32 1e-12, %v2437_v2 }
0x1712   :  { %v2438_v6 = vadd.f32 1e-12, %v2436_v4 }
0x1713   :  { %3322 = vrsqrt.f32 %v2439_v5 }
0x1714   :  { %3324 = vrsqrt.f32 %v2438_v6 }
0x171d   :  { %v3323_v7 = vpop.eup %3322 }
0x171e   :  { %v3325_v9 = vpop.eup %3324  ;;  %v2443_v10 = vmul.f32 %v3323_v7, %v2427_v50 }
0x171f   :  { %v2442_v11 = vmul.f32 %v3325_v9, %v2426_v51 }
0x1720   :  { %v2451_v13 = vmul.f32 %v2830_v8, %v2443_v10 }
0x1721   :  { %v2450_v14 = vmul.f32 %v2830_v8, %v2442_v11 }
0x1722   :  { %v2459_v15 = vadd.f32 %v2831_v12, %v2451_v13 }
0x1723   :  { %v2458_v16 = vadd.f32 %v2831_v12, %v2450_v14 }
0x1724   :  { %v2461_v17 = vrot.slane %v2459_v15, 7 }
0x1726   :  { %v2464_v18 = vsel %vm2463_vm5, %v2458_v16, %v2461_v17 }
0x1727   :  { %3134 = vmatmul.mubr.msk.f32.vlgmr.msra.gmra.mrb[28].mxu1 %vm77_vm0, %v2464_v18 }
0x1728   :  { %3144 = vmatprep.mubr.msk.f32.mxu1 %vm3357_vm1, %v3356_v36  ;;  %3246 = vmatpush3.bf16.msra.mxu1 %v3245_v22  ;;  %v2635_v36 = vld [vmem:[%s3968_s20] sm:$0xff]  ;;  %s2738_s20 = sshll.u32 %s3365_s19, 4  ;;  %s2739_s20 = int_to_ptr.vmem [resolvable:$true] %s2738_s20 }
0x1729   :  { %3247 = vmatprep.subr.bf16.mxu1 %v3364_v61  ;;  %v3251_v24 = vpack.c.bf16 %v2636_v33, %v2635_v36  ;;  %s3332_s21 = scalar_lea.vmem %s2739_s20, 32  ;;  %p3337_p1 = scmp.lt.s32.totalorder %s2739_s20, %s2739_s20 }
0x172a   :  { %p3333_p0 = scmp.ne.s32.totalorder %s2739_s20, %s3332_s21  ;;  %p3338_p2 = scmp.lt.s32.totalorder %s3332_s21, %s3332_s21 }
0x172b   :  { %3252 = vmatpush3.bf16.msra.mxu0 %v3251_v24 }
0x172c   :  { %3249 = vmatpush3.bf16.msra.mxu1 %v3248_v35  ;;  %3253 = vmatprep.subr.bf16.mxu0 %v3364_v61  ;;  %p3339_p3 = por %p3338_p2, %p3337_p1 }
0x172e   :  { %p3340_p4 = pnand %p3339_p3, %p3333_p0 }
0x172f   :  { %3255 = vmatpush3.bf16.msra.mxu0 %v3254_v31 }
0x17fa   :  { %v2545_v26 = vpop.f32.mrb[28].mxu1 }
0x17fb   :  { %v2546_v27 = vadd.f32 %v2832_v25, %v2545_v26  ;;  %v3135_v28 = vpop.f32.mrb[29].mxu1 }
0x17fd   :  { %3326 = vtanh.f32 %v2546_v27 }
0x1807   :  { %v3327_v49 = vpop.eup %3326 }
0x1808   :  { %3145 = vmatmul.mubr.msk.f32.vlgmr.msra.gmra.mrb[30].mxu1 %vm77_vm0, %v3327_v49 }
0x18db   :  { %v2630_v34 = vpop.f32.mrb[30].mxu1 }
0x18dc   :  { %v2631_v37 = vadd.f32 %v2834_v32, %v2630_v34  ;;  %v3146_v38 = vpop.f32.mrb[31].mxu1 }
0x18de   :  { %v2634_v39 = vmax.f32 %v2631_v37, 0.0 }
0x18e0   :  { %3156 = vmatmul.mubr.msk.f32.vlgmr.msra.gmra.mrb[20].mxu0 %vm77_vm0, %v2634_v39 }
0x19b3   :  { %v2715_v42 = vpop.f32.mrb[20].mxu0 }
0x19b4   :  { %v2716_v43 = vadd.f32 %v2836_v40, %v2715_v42  ;;  %v3157_v0 = vpop.f32.mrb[21].mxu0 }
0x19b6   :  { %v2720_v63 = vsel %vm2719_vm6, %v2716_v43, -inf }
0x19b7   :  { %2721 = vmax.xlane.f32.xlu0 %v2720_v63 }
0x1a44   :  { %v2722_v44 = vpop.xlane.xlu0 %2721 }
0x1a45   :  { %v2723_v56 = vsub.f32 %v2716_v43, %v2722_v44 }
0x1a47   :  { %v2724_v45 = vmul.f32 1.442695, %v2723_v56 }
0x1a49   :  { %3328 = vpow2.f32 %v2724_v45 }
0x1a53   :  { %v3329_v46 = vpop.eup %3328 }
0x1a54   :  { %v2726_v47 = vsel %vm2719_vm6, %v3329_v46, 0.0 }
0x1a55   :  { %2727 = vadd.xlane.f32.xlu1 %v2726_v47 }
0x1ae2   :  { %v2728_v48 = vpop.xlane.xlu1 %2727 }
0x1ae3   :  { %3330 = vrcp.f32 %v2728_v48 }
0x1aed   :  { %v3331_v50 = vpop.eup %3330 }
0x1aee   :  { %v2730_v51 = vmul.f32 %v3331_v50, %v3329_v46 }
0x1af0   :  { %2731 = vst.msk [vmem:[#allocation2] sm:$0x3] %vm2719_vm6, %v2730_v51 }
0x1af1   :  { %3343 = shalt.err (!%p3340_p4)
}
0x1af2   :  { %s3344_s28 = scalar_lea.hbm %s3970_s22, 32 }
0x1af3   :  { %p3345_p5 = scmp.ne.s32.totalorder %s3970_s22, %s3344_s28  ;;  %p3348_p6 = scmp.lt.u32.totalorder %s3344_s28, %s3970_s22 }
0x1af5   :  { %p3350_p7 = pnand %p3348_p6, %p3345_p5 }
0x1af7   :  { %3353 = shalt.err (!%p3350_p7)
}
0x1af8   :  { %2741 = dma.vmem_to_hbm [thread:$0]  %s2739_s20, 32, %s3970_s22, [#allocation3]  }
0x1af9   :  { %3354 = dma.done.wait [#allocation3], 32  }
0x1afa   :  { %3355 = vsyncadd [#allocation3], 4294967264 }
0x1afb   :  { %2745 = vsyncpa [#allocation3], 1 }

</bundles_post_ra>
